<compile_context>
chip_gen: v7x
topology: tpu7x:2x2x1
jax: 0.10.0
libtpu: 0.0.40
codegen_flags: <defaults>
</compile_context>

<pallas_src>
import math

import jax
import jax.numpy as jnp
from jax import lax
from jax.experimental import pallas as pl
from jax.experimental.pallas import tpu as pltpu

RP_SIZE = 512       # projection output width
N_OUTPUTS = 1024    # flattened input features
H1 = 512
H2 = 256
N_CLASSES = 2
N_OUT_PAD = 128     # lane-dense padded logits width


def _disc_kernel(x_ref, wp_ref, w1_ref, b1_ref, w2_ref, b2_ref, w3_ref, b3_ref,
                 out_ref):
    # Activations enter the MXU as bf16, accumulate in f32; elementwise in f32.
    x = x_ref[...]                                                       # (TB, 1024) bf16

    # Random projection (no bias).
    proj = jnp.dot(x, wp_ref[...], preferred_element_type=jnp.float32)   # (TB, 512) f32

    # d_fc1 + ReLU   (d_drop1 is identity at inference)
    h1 = jnp.dot(proj.astype(jnp.bfloat16), w1_ref[...],
                 preferred_element_type=jnp.float32) + b1_ref[...]
    h1 = jnp.maximum(h1, 0.0)                                            # (TB, 512)

    # d_fc2 + ReLU   (d_drop2 is identity at inference)
    h2 = jnp.dot(h1.astype(jnp.bfloat16), w2_ref[...],
                 preferred_element_type=jnp.float32) + b2_ref[...]
    h2 = jnp.maximum(h2, 0.0)                                            # (TB, 256)

    # d_fc3 — lane-dense padded to 128 output columns (only first 2 are real).
    logits = jnp.dot(h2.astype(jnp.bfloat16), w3_ref[...],
                     preferred_element_type=jnp.float32) + b3_ref[...]   # (TB, 128)

    # Mask padded lanes so they do not affect the log-softmax.
    lane = lax.broadcasted_iota(jnp.int32, logits.shape, 1)
    logits = jnp.where(lane < N_CLASSES, logits, jnp.float32(-1e30))

    # LogSoftmax over dim=1 (numerically stable), full-width lane-dense store.
    m = jnp.max(logits, axis=1, keepdims=True)
    lse = m + jnp.log(jnp.sum(jnp.exp(logits - m), axis=1, keepdims=True))
    out_ref[...] = logits - lse
    # TODO(synk): Dropout(0.2) layers are identity here (eval-mode forward); a
    # training-mode kernel would use pltpu.prng_seed / pltpu.prng_random_bits.


def _round_up(v, m):
    return ((v + m - 1) // m) * m


@jax.jit
def domain_discriminator_forward(x, params):
    """x: (B, C, H, W) or (B, F) flattening to 1024 features. Returns (B, 2)."""
    wp, w1, b1, w2, b2, w3, b3 = params
    b = x.shape[0]
    feature = x.reshape(b, -1).astype(jnp.bfloat16)                      # (B, 1024)
    assert feature.shape[1] == N_OUTPUTS

    # Batch tile: 256 keeps the v6e/v7x MXU fed; for tiny B use a single tile
    # padded to the 8-sublane boundary instead of blowing up to 256 rows.
    b8 = _round_up(max(b, 1), 8)
    tb = min(256, b8)
    b_pad = _round_up(b8, tb)
    if b_pad != b:
        feature = jnp.pad(feature, ((0, b_pad - b), (0, 0)))
    grid = (b_pad // tb,)

    # Advisory cost for XLA's scheduler around the custom call.
    mac = N_OUTPUTS * RP_SIZE + RP_SIZE * H1 + H1 * H2 + H2 * N_OUT_PAD
    weight_bytes = 2 * mac + 4 * (H1 + H2 + N_OUT_PAD)
    cost = pl.CostEstimate(
        flops=2 * b_pad * mac,
        transcendentals=b_pad * (N_OUT_PAD + 1),
        bytes_accessed=weight_bytes + b_pad * N_OUTPUTS * 2 + b_pad * N_OUT_PAD * 4,
    )

    full = lambda i: (0, 0)   # weights/biases: same block every step -> resident
    out = pl.pallas_call(
        _disc_kernel,
        out_shape=jax.ShapeDtypeStruct((b_pad, N_OUT_PAD), jnp.float32),
        grid=grid,
        in_specs=[
            pl.BlockSpec((tb, N_OUTPUTS), lambda i: (i, 0)),   # streamed activations
            pl.BlockSpec((N_OUTPUTS, RP_SIZE), full),          # Wp
            pl.BlockSpec((RP_SIZE, H1), full),                 # W1
            pl.BlockSpec((1, H1), full),                       # b1
            pl.BlockSpec((H1, H2), full),                      # W2
            pl.BlockSpec((1, H2), full),                       # b2
            pl.BlockSpec((H2, N_OUT_PAD), full),               # W3 (lane-padded)
            pl.BlockSpec((1, N_OUT_PAD), full),                # b3 (lane-padded)
        ],
        out_specs=pl.BlockSpec((tb, N_OUT_PAD), lambda i: (i, 0)),
        compiler_params=pltpu.CompilerParams(
            dimension_semantics=("parallel",)),
        cost_estimate=cost,
    )(feature, wp, w1, b1, w2, b2, w3, b3)

    return out[:b, :N_CLASSES]


def init_params(key):
    """Kernel-ready params: weights transposed to (in, out), pre-cast to bf16,
    projection weight normalized by its global L2 norm, final layer padded to
    a lane-dense width of 128. Done once, outside the hot path."""
    k_p, k1, k2, k3 = jax.random.split(key, 4)

    def kaiming_uniform(k, fan_in, shape):
        bound = math.sqrt(6.0 / fan_in)
        return jax.random.uniform(k, shape, jnp.float32, -bound, bound)

    # projection: nn.Linear(1024, 512, bias=False); weight / ||weight|| (global L2).
    wp = kaiming_uniform(k_p, N_OUTPUTS, (N_OUTPUTS, RP_SIZE))
    wp = wp / jnp.linalg.norm(wp)

    # d_fc1: Linear(512, 512), d_fc2: Linear(512, 256), d_fc3: Linear(256, 2)
    w1 = kaiming_uniform(k1, RP_SIZE, (RP_SIZE, H1))
    b1 = jnp.zeros((1, H1), jnp.float32)
    w2 = kaiming_uniform(k2, H1, (H1, H2))
    b2 = jnp.zeros((1, H2), jnp.float32)
    w3 = kaiming_uniform(k3, H2, (H2, N_CLASSES))
    b3 = jnp.zeros((1, N_CLASSES), jnp.float32)

    # Pad the 2-class head to 128 lanes (extra columns zero; masked in-kernel).
    w3p = jnp.zeros((H2, N_OUT_PAD), jnp.float32).at[:, :N_CLASSES].set(w3)
    b3p = jnp.zeros((1, N_OUT_PAD), jnp.float32).at[:, :N_CLASSES].set(b3)

    # bf16 weights halve HBM traffic / VMEM; biases stay f32 for the VPU adds.
    return (wp.astype(jnp.bfloat16),
            w1.astype(jnp.bfloat16), b1,
            w2.astype(jnp.bfloat16), b2,
            w3p.astype(jnp.bfloat16), b3p)


if __name__ == "__main__":
    key = jax.random.PRNGKey(0)
    k_x, k_params = jax.random.split(key)

    # Input consistent with forward: flattens to n_outputs = 1024 features.
    # (B=2, C=4, H=16, W=16) -> 4*16*16 = 1024.
    x = jax.random.normal(k_x, (2, 4, 16, 16), jnp.float32)
    params = init_params(k_params)

    out = domain_discriminator_forward(x, params)
    out = jax.block_until_ready(out)

    assert out.shape == (2, 2)
    # log_softmax rows must exp-sum to 1.
    assert bool(jnp.allclose(jnp.sum(jnp.exp(out), axis=1), 1.0, atol=1e-5))
    print("KERNEL_OK")
</pallas_src>

<mosaic_0001>
module attributes {stable_mosaic.version = 11 : i64} {
  func.func @_disc_kernel(%arg0: i32, %arg1: memref<8x1024xbf16, #tpu.memory_space<vmem>>, %arg2: memref<1024x512xbf16, #tpu.memory_space<vmem>>, %arg3: memref<512x512xbf16, #tpu.memory_space<vmem>>, %arg4: memref<1x512xf32, #tpu.memory_space<vmem>>, %arg5: memref<512x256xbf16, #tpu.memory_space<vmem>>, %arg6: memref<1x256xf32, #tpu.memory_space<vmem>>, %arg7: memref<256x128xbf16, #tpu.memory_space<vmem>>, %arg8: memref<1x128xf32, #tpu.memory_space<vmem>>, %arg9: memref<8x128xf32, #tpu.memory_space<vmem>>) attributes {dimension_semantics = [#tpu.dimension_semantics<parallel>], iteration_bounds = array<i64: 1>, scalar_prefetch = 0 : i64, scratch_operands = 0 : i64, tpu.core_type = #tpu.core_type<tc>, window_params = [{transform_indices = @transform_0, window_bounds = array<i64: 8, 1024>}, {pipeline_mode = #tpu.pipeline_mode<synchronous>, transform_indices = @transform_1, window_bounds = array<i64: 1024, 512>}, {pipeline_mode = #tpu.pipeline_mode<synchronous>, transform_indices = @transform_2, window_bounds = array<i64: 512, 512>}, {pipeline_mode = #tpu.pipeline_mode<synchronous>, transform_indices = @transform_3, window_bounds = array<i64: 1, 512>}, {pipeline_mode = #tpu.pipeline_mode<synchronous>, transform_indices = @transform_4, window_bounds = array<i64: 512, 256>}, {pipeline_mode = #tpu.pipeline_mode<synchronous>, transform_indices = @transform_5, window_bounds = array<i64: 1, 256>}, {pipeline_mode = #tpu.pipeline_mode<synchronous>, transform_indices = @transform_6, window_bounds = array<i64: 256, 128>}, {pipeline_mode = #tpu.pipeline_mode<synchronous>, transform_indices = @transform_7, window_bounds = array<i64: 1, 128>}, {transform_indices = @transform_8, window_bounds = array<i64: 8, 128>}]} {
    %c0 = arith.constant 0 : index
    %c0_0 = arith.constant 0 : index
    %0 = vector.load %arg1[%c0, %c0_0] : memref<8x1024xbf16, #tpu.memory_space<vmem>>, vector<8x1024xbf16>
    %c0_1 = arith.constant 0 : index
    %c0_2 = arith.constant 0 : index
    %1 = vector.load %arg2[%c0_1, %c0_2] : memref<1024x512xbf16, #tpu.memory_space<vmem>>, vector<1024x512xbf16>
    %cst = arith.constant dense<0.000000e+00> : vector<8x512xf32>
    %2 = tpu.matmul %0, %1, %cst {dimension_numbers = #tpu.dot_dimension_numbers<[1], [0], [0], [1], [0, 0, 1, 1], [], []>} : vector<8x1024xbf16>, vector<1024x512xbf16>, vector<8x512xf32> -> vector<8x512xf32>
    %3 = arith.truncf %2 : vector<8x512xf32> to vector<8x512xbf16>
    %c0_3 = arith.constant 0 : index
    %c0_4 = arith.constant 0 : index
    %4 = vector.load %arg3[%c0_3, %c0_4] : memref<512x512xbf16, #tpu.memory_space<vmem>>, vector<512x512xbf16>
    %cst_5 = arith.constant dense<0.000000e+00> : vector<8x512xf32>
    %5 = tpu.matmul %3, %4, %cst_5 {dimension_numbers = #tpu.dot_dimension_numbers<[1], [0], [0], [1], [0, 0, 1, 1], [], []>} : vector<8x512xbf16>, vector<512x512xbf16>, vector<8x512xf32> -> vector<8x512xf32>
    %c0_6 = arith.constant 0 : index
    %c0_7 = arith.constant 0 : index
    %6 = vector.load %arg4[%c0_6, %c0_7] : memref<1x512xf32, #tpu.memory_space<vmem>>, vector<1x512xf32>
    %7 = vector.broadcast %6 : vector<1x512xf32> to vector<8x512xf32>
    %8 = arith.addf %5, %7 : vector<8x512xf32>
    %cst_8 = arith.constant 0.000000e+00 : f32
    %9 = vector.broadcast %cst_8 : f32 to vector<8x512xf32>
    %10 = arith.maximumf %8, %9 : vector<8x512xf32>
    %11 = arith.truncf %10 : vector<8x512xf32> to vector<8x512xbf16>
    %c0_9 = arith.constant 0 : index
    %c0_10 = arith.constant 0 : index
    %12 = vector.load %arg5[%c0_9, %c0_10] : memref<512x256xbf16, #tpu.memory_space<vmem>>, vector<512x256xbf16>
    %cst_11 = arith.constant dense<0.000000e+00> : vector<8x256xf32>
    %13 = tpu.matmul %11, %12, %cst_11 {dimension_numbers = #tpu.dot_dimension_numbers<[1], [0], [0], [1], [0, 0, 1, 1], [], []>} : vector<8x512xbf16>, vector<512x256xbf16>, vector<8x256xf32> -> vector<8x256xf32>
    %c0_12 = arith.constant 0 : index
    %c0_13 = arith.constant 0 : index
    %14 = vector.load %arg6[%c0_12, %c0_13] : memref<1x256xf32, #tpu.memory_space<vmem>>, vector<1x256xf32>
    %15 = vector.broadcast %14 : vector<1x256xf32> to vector<8x256xf32>
    %16 = arith.addf %13, %15 : vector<8x256xf32>
    %cst_14 = arith.constant 0.000000e+00 : f32
    %17 = vector.broadcast %cst_14 : f32 to vector<8x256xf32>
    %18 = arith.maximumf %16, %17 : vector<8x256xf32>
    %19 = arith.truncf %18 : vector<8x256xf32> to vector<8x256xbf16>
    %c0_15 = arith.constant 0 : index
    %c0_16 = arith.constant 0 : index
    %20 = vector.load %arg7[%c0_15, %c0_16] : memref<256x128xbf16, #tpu.memory_space<vmem>>, vector<256x128xbf16>
    %cst_17 = arith.constant dense<0.000000e+00> : vector<8x128xf32>
    %21 = tpu.matmul %19, %20, %cst_17 {dimension_numbers = #tpu.dot_dimension_numbers<[1], [0], [0], [1], [0, 0, 1, 1], [], []>} : vector<8x256xbf16>, vector<256x128xbf16>, vector<8x128xf32> -> vector<8x128xf32>
    %c0_18 = arith.constant 0 : index
    %c0_19 = arith.constant 0 : index
    %22 = vector.load %arg8[%c0_18, %c0_19] : memref<1x128xf32, #tpu.memory_space<vmem>>, vector<1x128xf32>
    %23 = vector.broadcast %22 : vector<1x128xf32> to vector<8x128xf32>
    %24 = arith.addf %21, %23 : vector<8x128xf32>
    %25 = tpu.iota {dimensions = array<i32: 1>} : vector<8x128xi32>
    %c2_i32 = arith.constant 2 : i32
    %26 = vector.broadcast %c2_i32 : i32 to vector<8x128xi32>
    %27 = arith.cmpi slt, %25, %26 : vector<8x128xi32>
    %cst_20 = arith.constant -1.000000e+30 : f32
    %28 = vector.broadcast %cst_20 : f32 to vector<8x128xf32>
    %29 = arith.select %27, %24, %28 : vector<8x128xi1>, vector<8x128xf32>
    %cst_21 = arith.constant dense<0xFF800000> : vector<8xf32>
    %30 = vector.multi_reduction <maximumf>, %29, %cst_21 [1] : vector<8x128xf32> to vector<8xf32>
    %31 = vector.shape_cast %30 : vector<8xf32> to vector<8x1xf32>
    %32 = vector.broadcast %31 : vector<8x1xf32> to vector<8x128xf32>
    %33 = arith.subf %29, %32 : vector<8x128xf32>
    %34 = math.exp %33 : vector<8x128xf32>
    %cst_22 = arith.constant dense<0.000000e+00> : vector<8xf32>
    %35 = vector.multi_reduction <add>, %34, %cst_22 [1] : vector<8x128xf32> to vector<8xf32>
    %36 = vector.shape_cast %35 : vector<8xf32> to vector<8x1xf32>
    %37 = math.log %36 : vector<8x1xf32>
    %38 = arith.addf %31, %37 : vector<8x1xf32>
    %39 = vector.broadcast %38 : vector<8x1xf32> to vector<8x128xf32>
    %40 = arith.subf %29, %39 : vector<8x128xf32>
    %c0_23 = arith.constant 0 : index
    %c0_24 = arith.constant 0 : index
    %41 = vector.load %arg9[%c0_23, %c0_24] : memref<8x128xf32, #tpu.memory_space<vmem>>, vector<8x128xf32>
    tpu.vector_store %arg9[%c0_23, %c0_24], %40 {strides = array<i32>} : memref<8x128xf32, #tpu.memory_space<vmem>>, vector<8x128xf32>,
    return
  }
  func.func @transform_0(%arg0: i32) -> (i32, i32) {
    %c0_i32 = arith.constant 0 : i32
    %c0_i32_0 = arith.constant 0 : i32
    return %arg0, %c0_i32 : i32, i32
  }
  func.func @transform_1(%arg0: i32) -> (i32, i32) {
    %c0_i32 = arith.constant 0 : i32
    %c0_i32_0 = arith.constant 0 : i32
    %c0_i32_1 = arith.constant 0 : i32
    return %c0_i32, %c0_i32_0 : i32, i32
  }
  func.func @transform_2(%arg0: i32) -> (i32, i32) {
    %c0_i32 = arith.constant 0 : i32
    %c0_i32_0 = arith.constant 0 : i32
    %c0_i32_1 = arith.constant 0 : i32
    return %c0_i32, %c0_i32_0 : i32, i32
  }
  func.func @transform_3(%arg0: i32) -> (i32, i32) {
    %c0_i32 = arith.constant 0 : i32
    %c0_i32_0 = arith.constant 0 : i32
    %c0_i32_1 = arith.constant 0 : i32
    return %c0_i32, %c0_i32_0 : i32, i32
  }
  func.func @transform_4(%arg0: i32) -> (i32, i32) {
    %c0_i32 = arith.constant 0 : i32
    %c0_i32_0 = arith.constant 0 : i32
    %c0_i32_1 = arith.constant 0 : i32
    return %c0_i32, %c0_i32_0 : i32, i32
  }
  func.func @transform_5(%arg0: i32) -> (i32, i32) {
    %c0_i32 = arith.constant 0 : i32
    %c0_i32_0 = arith.constant 0 : i32
    %c0_i32_1 = arith.constant 0 : i32
    return %c0_i32, %c0_i32_0 : i32, i32
  }
  func.func @transform_6(%arg0: i32) -> (i32, i32) {
    %c0_i32 = arith.constant 0 : i32
    %c0_i32_0 = arith.constant 0 : i32
    %c0_i32_1 = arith.constant 0 : i32
    return %c0_i32, %c0_i32_0 : i32, i32
  }
  func.func @transform_7(%arg0: i32) -> (i32, i32) {
    %c0_i32 = arith.constant 0 : i32
    %c0_i32_0 = arith.constant 0 : i32
    %c0_i32_1 = arith.constant 0 : i32
    return %c0_i32, %c0_i32_0 : i32, i32
  }
  func.func @transform_8(%arg0: i32) -> (i32, i32) {
    %c0_i32 = arith.constant 0 : i32
    %c0_i32_0 = arith.constant 0 : i32
    return %arg0, %c0_i32 : i32, i32
  }
}

</mosaic_0001>

<bundles_post_ra>
// kernel: domain_discriminator_forward.1
= control target key start
LH: loop header
LB: loop body
LE: loop exit
PB: predicated region body
PF: predicated region fallthrough
CT: control target
= control target key end

     0   :  { %13 = vsyncpa [#allocation3], 0  ;;  %s5166_s0 = inlined_call_operand.vmem [shape: bf16[8,1024], index: 0, kind: input, shape index: {}]   ;;  %s5167_s1 = inlined_call_operand.hbm [shape: bf16[1024,512], index: 1, kind: input, shape index: {}]   ;;  %s5168_s2 = inlined_call_operand.hbm [shape: bf16[512,512], index: 2, kind: input, shape index: {}]   ;;  %s5169_s3 = inlined_call_operand.vmem [shape: f32[1,512], index: 3, kind: input, shape index: {}]   ;;  %s5170_s4 = inlined_call_operand.hbm [shape: bf16[512,256], index: 4, kind: input, shape index: {}]   ;;  %s5171_s5 = inlined_call_operand.vmem [shape: f32[1,256], index: 5, kind: input, shape index: {}]   ;;  %s5172_s6 = inlined_call_operand.vmem [shape: bf16[256,128], index: 6, kind: input, shape index: {}]   ;;  %s5173_s7 = inlined_call_operand.vmem [shape: f32[1,128], index: 7, kind: input, shape index: {}]   ;;  %s5174_s8 = inlined_call_operand.vmem [shape: f32[8,128], index: 8, kind: output, shape index: {}]  }
   0x1   :  { %14 = vsyncpa [#allocation5], 0  ;;  %s4924_s27 = smov [#allocation4]   ;;  %s4925_s29 = smov [#allocation2]  }
   0x2   :  { %s34_s28 = sshll.u32 %s4924_s27, 4  ;;  %s22_s30 = sshll.u32 %s4925_s29, 4  ;;  %s35_s28 = int_to_ptr.vmem [resolvable:$true] %s34_s28  ;;  %s4976_s30 = int_to_ptr.vmem [resolvable:$true] %s22_s30 }
   0x3   :  { %s4854_s11 = scalar_lea.hbm %s5168_s2, 16384 }
   0x4   :  { %p4855_p0 = scmp.ne.s32.totalorder %s5168_s2, %s4854_s11  ;;  %p4858_p1 = scmp.lt.u32.totalorder %s4854_s11, %s5168_s2 }
   0x6   :  { %p4860_p2 = pnand %p4858_p1, %p4855_p0 }
   0x8   :  { %4863 = shalt.err (!%p4860_p2)
}
   0x9   :  { %s4864_s16 = scalar_lea.vmem %s35_s28, 16384  ;;  %p4869_p4 = scmp.lt.s32.totalorder %s35_s28, %s35_s28 }
   0xa   :  { %p4865_p3 = scmp.ne.s32.totalorder %s35_s28, %s4864_s16  ;;  %p4870_p5 = scmp.lt.s32.totalorder %s4864_s16, %s4864_s16 }
   0xc   :  { %p4871_p6 = por %p4870_p5, %p4869_p4 }
   0xe   :  { %p4872_p7 = pnand %p4871_p6, %p4865_p3 }
  0x10   :  { %4875 = shalt.err (!%p4872_p7)
}
  0x11   :  { %s4926_s17 = smov 256   ;;  %s4927_s18 = smov 16  }
  0x12   :  { %40 = dma.hbm_to_vmem [thread:$0]  %s5168_s2, 16384, %s35_s28, [#allocation5], %s4926_s17, %s4926_s17, %s4927_s18  }
  0x13   :  { %s4876_s23 = scalar_lea.hbm %s5167_s1, 32768 }
  0x14   :  { %p4877_p8 = scmp.ne.s32.totalorder %s5167_s1, %s4876_s23  ;;  %p4880_p9 = scmp.lt.u32.totalorder %s4876_s23, %s5167_s1 }
  0x16   :  { %p4882_p10 = pnand %p4880_p9, %p4877_p8 }
  0x18   :  { %4885 = shalt.err (!%p4882_p10)
}
  0x19   :  { %s4886_s29 = scalar_lea.vmem %s4976_s30, 32768  ;;  %p4891_p12 = scmp.lt.s32.totalorder %s4976_s30, %s4976_s30 }
  0x1a   :  { %p4887_p11 = scmp.ne.s32.totalorder %s4976_s30, %s4886_s29  ;;  %p4892_p13 = scmp.lt.s32.totalorder %s4886_s29, %s4886_s29 }
  0x1c   :  { %p4893_p0 = por %p4892_p13, %p4891_p12 }
  0x1e   :  { %p4894_p1 = pnand %p4893_p0, %p4887_p11 }
  0x20   :  { %4897 = shalt.err (!%p4894_p1)
}
  0x21   :  { %28 = dma.hbm_to_vmem [thread:$0]  %s5167_s1, 32768, %s4976_s30, [#allocation3], %s4926_s17, %s4926_s17, %s4927_s18  }
  0x22   :  { %s4928_s9 = smov [#allocation6]   ;;  %s4898_s13 = scalar_lea.hbm %s5170_s4, 8192 }
  0x23   :  { %s48_s10 = sshll.u32 %s4928_s9, 4  ;;  %p4899_p2 = scmp.ne.s32.totalorder %s5170_s4, %s4898_s13  ;;  %s49_s10 = int_to_ptr.vmem [resolvable:$true] %s48_s10 }
  0x24   :  { %p4902_p3 = scmp.lt.u32.totalorder %s4898_s13, %s5170_s4 }
  0x26   :  { %p4904_p4 = pnand %p4902_p3, %p4899_p2 }
  0x28   :  { %4907 = shalt.err (!%p4904_p4)
}
  0x29   :  { %s4908_s20 = scalar_lea.vmem %s49_s10, 8192  ;;  %p4913_p6 = scmp.lt.s32.totalorder %s49_s10, %s49_s10 }
  0x2a   :  { %p4909_p5 = scmp.ne.s32.totalorder %s49_s10, %s4908_s20  ;;  %p4914_p7 = scmp.lt.s32.totalorder %s4908_s20, %s4908_s20 }
  0x2c   :  { %p4915_p8 = por %p4914_p7, %p4913_p6 }
  0x2e   :  { %p4916_p9 = pnand %p4915_p8, %p4909_p5 }
  0x30   :  { %4919 = shalt.err (!%p4916_p9)
}
  0x31   :  { %s4929_s1 = smov 128   ;;  %s4930_s30 = smov 8  }
  0x32   :  { %54 = dma.hbm_to_vmem [thread:$0]  %s5170_s4, 8192, %s49_s10, [#allocation5], %s4929_s1, %s4929_s1, %s4930_s30  }
  0x33   :  { %4920 = dma.done.wait [#allocation3], 32768  }
  0x34   :  { %4921 = vsyncadd [#allocation3], 4294934528 }
  0x35   :  { %4922 = dma.done.wait [#allocation5], 24576  }
  0x36   :  { %4923 = vsyncadd [#allocation5], 4294942720  ;;  %v4154_v0 = vld [vmem:[#allocation2 + $0x4] ss:$16 sps:$4 sm:$0xff]   ;;  %v4158_v2 = vld [vmem:[#allocation2] ss:$16 sps:$4 sm:$0xff]  }
  0x37   :  { %v4156_v1 = vld [vmem:[#allocation2 + $0x204] ss:$16 sps:$4 sm:$0xff]   ;;  %1639 = vmatprep.subr.bf16.mxu1 %v4154_v0  ;;  %v4159_v3 = vld [vmem:[#allocation2 + $0x200] ss:$16 sps:$4 sm:$0xff]   ;;  %v72_v48 = vld [vmem:[%s5166_s0 + $0x8] sm:$0xff] }
  0x38   :  { %1680 = vmatprep.subr.bf16.mxu0 %v4156_v1  ;;  %v4160_v4 = vld [vmem:[#allocation2 + $0x24] ss:$16 sps:$4 sm:$0xff]   ;;  %1640 = vmatpush1.bf16.msra.mxu1 %v4158_v2  ;;  %v4164_v6 = vld [vmem:[#allocation2 + $0x20] ss:$16 sps:$4 sm:$0xff]   ;;  %v5027_v51 = vcombine.high %v72_v48, %v72_v48 }
  0x39   :  { %1681 = vmatpush1.bf16.msra.mxu0 %v4159_v3  ;;  %v4162_v5 = vld [vmem:[#allocation2 + $0x224] ss:$16 sps:$4 sm:$0xff]   ;;  %1641 = vmatprep.subr.bf16.mxu1 %v4160_v4  ;;  %v4165_v7 = vld [vmem:[#allocation2 + $0x220] ss:$16 sps:$4 sm:$0xff]  }
  0x3a   :  { %1682 = vmatprep.subr.bf16.mxu0 %v4162_v5  ;;  %v4166_v8 = vld [vmem:[#allocation2 + $0x44] ss:$16 sps:$4 sm:$0xff]   ;;  %v4170_v10 = vld [vmem:[#allocation2 + $0x40] ss:$16 sps:$4 sm:$0xff]   ;;  %1712 = vmatprep.mubr.bf16.mxu0 %v5027_v51  ;;  %v4259_v5 = vld [vmem:[#allocation2 + $0xc] ss:$16 sps:$4 sm:$0xff]  }
  0x3b   :  { %v4168_v9 = vld [vmem:[#allocation2 + $0x244] ss:$16 sps:$4 sm:$0xff]   ;;  %v4171_v11 = vld [vmem:[#allocation2 + $0x240] ss:$16 sps:$4 sm:$0xff]  }
  0x3c   :  { %1642 = vmatpush1.bf16.msra.mxu1 %v4164_v6  ;;  %v4172_v12 = vld [vmem:[#allocation2 + $0x64] ss:$16 sps:$4 sm:$0xff]   ;;  %v4176_v14 = vld [vmem:[#allocation2 + $0x60] ss:$16 sps:$4 sm:$0xff]  }
  0x3d   :  { %1683 = vmatpush1.bf16.msra.mxu0 %v4165_v7  ;;  %1643 = vmatprep.subr.bf16.mxu1 %v4166_v8  ;;  %v4174_v13 = vld [vmem:[#allocation2 + $0x264] ss:$16 sps:$4 sm:$0xff]   ;;  %v4177_v15 = vld [vmem:[#allocation2 + $0x260] ss:$16 sps:$4 sm:$0xff]   ;;  %v5033_v7 = vcombine.low %v72_v48, %v72_v48 }
  0x3e   :  { %1684 = vmatprep.subr.bf16.mxu0 %v4168_v9  ;;  %v4178_v16 = vld [vmem:[#allocation2 + $0x84] ss:$16 sps:$4 sm:$0xff]   ;;  %v4182_v18 = vld [vmem:[#allocation2 + $0x80] ss:$16 sps:$4 sm:$0xff]   ;;  %v4257_v9 = vld [vmem:[#allocation2 + $0x8] ss:$16 sps:$4 sm:$0xff]  }
  0x3f   :  { %v4180_v17 = vld [vmem:[#allocation2 + $0x284] ss:$16 sps:$4 sm:$0xff]   ;;  %v4183_v19 = vld [vmem:[#allocation2 + $0x280] ss:$16 sps:$4 sm:$0xff]  }
  0x40   :  { %1644 = vmatpush1.bf16.msra.mxu1 %v4170_v10  ;;  %v4184_v20 = vld [vmem:[#allocation2 + $0xa4] ss:$16 sps:$4 sm:$0xff]   ;;  %v4188_v22 = vld [vmem:[#allocation2 + $0xa0] ss:$16 sps:$4 sm:$0xff]  }
  0x41   :  { %1685 = vmatpush1.bf16.msra.mxu0 %v4171_v11  ;;  %1645 = vmatprep.subr.bf16.mxu1 %v4172_v12  ;;  %v4186_v21 = vld [vmem:[#allocation2 + $0x2a4] ss:$16 sps:$4 sm:$0xff]   ;;  %v4189_v23 = vld [vmem:[#allocation2 + $0x2a0] ss:$16 sps:$4 sm:$0xff]   ;;  %v4265_v11 = vld [vmem:[#allocation2 + $0x2c] ss:$16 sps:$4 sm:$0xff]  }
  0x42   :  { %1686 = vmatprep.subr.bf16.mxu0 %v4174_v13  ;;  %v4190_v24 = vld [vmem:[#allocation2 + $0xc4] ss:$16 sps:$4 sm:$0xff]   ;;  %v4194_v26 = vld [vmem:[#allocation2 + $0xc0] ss:$16 sps:$4 sm:$0xff]   ;;  %v4263_v13 = vld [vmem:[#allocation2 + $0x28] ss:$16 sps:$4 sm:$0xff]  }
  0x43   :  { %v4192_v25 = vld [vmem:[#allocation2 + $0x2c4] ss:$16 sps:$4 sm:$0xff]   ;;  %v4195_v27 = vld [vmem:[#allocation2 + $0x2c0] ss:$16 sps:$4 sm:$0xff]  }
  0x44   :  { %1646 = vmatpush1.bf16.msra.mxu1 %v4176_v14  ;;  %v4196_v28 = vld [vmem:[#allocation2 + $0xe4] ss:$16 sps:$4 sm:$0xff]   ;;  %v4200_v30 = vld [vmem:[#allocation2 + $0xe0] ss:$16 sps:$4 sm:$0xff]  }
  0x45   :  { %1687 = vmatpush1.bf16.msra.mxu0 %v4177_v15  ;;  %1647 = vmatprep.subr.bf16.mxu1 %v4178_v16  ;;  %v4198_v29 = vld [vmem:[#allocation2 + $0x2e4] ss:$16 sps:$4 sm:$0xff]   ;;  %v4201_v31 = vld [vmem:[#allocation2 + $0x2e0] ss:$16 sps:$4 sm:$0xff]   ;;  %v4271_v15 = vld [vmem:[#allocation2 + $0x4c] ss:$16 sps:$4 sm:$0xff]  }
  0x46   :  { %1688 = vmatprep.subr.bf16.mxu0 %v4180_v17  ;;  %v4202_v32 = vld [vmem:[#allocation2 + $0x104] ss:$16 sps:$4 sm:$0xff]   ;;  %v4206_v34 = vld [vmem:[#allocation2 + $0x100] ss:$16 sps:$4 sm:$0xff]   ;;  %v4269_v17 = vld [vmem:[#allocation2 + $0x48] ss:$16 sps:$4 sm:$0xff]  }
  0x47   :  { %v4204_v33 = vld [vmem:[#allocation2 + $0x304] ss:$16 sps:$4 sm:$0xff]   ;;  %v4207_v35 = vld [vmem:[#allocation2 + $0x300] ss:$16 sps:$4 sm:$0xff]  }
  0x48   :  { %1648 = vmatpush1.bf16.msra.mxu1 %v4182_v18  ;;  %v4208_v36 = vld [vmem:[#allocation2 + $0x124] ss:$16 sps:$4 sm:$0xff]   ;;  %v4212_v38 = vld [vmem:[#allocation2 + $0x120] ss:$16 sps:$4 sm:$0xff]  }
  0x49   :  { %1689 = vmatpush1.bf16.msra.mxu0 %v4183_v19  ;;  %1649 = vmatprep.subr.bf16.mxu1 %v4184_v20  ;;  %v4210_v37 = vld [vmem:[#allocation2 + $0x324] ss:$16 sps:$4 sm:$0xff]   ;;  %v4213_v39 = vld [vmem:[#allocation2 + $0x320] ss:$16 sps:$4 sm:$0xff]   ;;  %v4277_v19 = vld [vmem:[#allocation2 + $0x6c] ss:$16 sps:$4 sm:$0xff]  }
  0x4a   :  { %1690 = vmatprep.subr.bf16.mxu0 %v4186_v21  ;;  %v4214_v40 = vld [vmem:[#allocation2 + $0x144] ss:$16 sps:$4 sm:$0xff]   ;;  %v4218_v42 = vld [vmem:[#allocation2 + $0x140] ss:$16 sps:$4 sm:$0xff]   ;;  %v4275_v21 = vld [vmem:[#allocation2 + $0x68] ss:$16 sps:$4 sm:$0xff]  }
  0x4b   :  { %v4216_v41 = vld [vmem:[#allocation2 + $0x344] ss:$16 sps:$4 sm:$0xff]   ;;  %v4219_v43 = vld [vmem:[#allocation2 + $0x340] ss:$16 sps:$4 sm:$0xff]  }
  0x4c   :  { %1650 = vmatpush1.bf16.msra.mxu1 %v4188_v22  ;;  %v4220_v44 = vld [vmem:[#allocation2 + $0x164] ss:$16 sps:$4 sm:$0xff]   ;;  %v4224_v49 = vld [vmem:[#allocation2 + $0x160] ss:$16 sps:$4 sm:$0xff]  }
  0x4d   :  { %1691 = vmatpush1.bf16.msra.mxu0 %v4189_v23  ;;  %1651 = vmatprep.subr.bf16.mxu1 %v4190_v24  ;;  %v4222_v45 = vld [vmem:[#allocation2 + $0x364] ss:$16 sps:$4 sm:$0xff]   ;;  %v4225_v50 = vld [vmem:[#allocation2 + $0x360] ss:$16 sps:$4 sm:$0xff]   ;;  %v4283_v23 = vld [vmem:[#allocation2 + $0x8c] ss:$16 sps:$4 sm:$0xff]  }
  0x4e   :  { %1692 = vmatprep.subr.bf16.mxu0 %v4192_v25  ;;  %v71_v46 = vld [vmem:[%s5166_s0] sm:$0xff]  ;;  %v4281_v25 = vld [vmem:[#allocation2 + $0x88] ss:$16 sps:$4 sm:$0xff]  }
  0x4f   :  { %v5022_v47 = vcombine.high %v71_v46, %v71_v46  ;;  %v4226_v52 = vld [vmem:[#allocation2 + $0x184] ss:$16 sps:$4 sm:$0xff]   ;;  %v4230_v54 = vld [vmem:[#allocation2 + $0x180] ss:$16 sps:$4 sm:$0xff]   ;;  %v5031_v6 = vcombine.low %v71_v46, %v71_v46 }
  0x50   :  { %1652 = vmatpush1.bf16.msra.mxu1 %v4194_v26  ;;  %v4228_v53 = vld [vmem:[#allocation2 + $0x384] ss:$16 sps:$4 sm:$0xff]   ;;  %v4231_v55 = vld [vmem:[#allocation2 + $0x380] ss:$16 sps:$4 sm:$0xff]  }
  0x51   :  { %1693 = vmatpush1.bf16.msra.mxu0 %v4195_v27  ;;  %1653 = vmatprep.subr.bf16.mxu1 %v4196_v28  ;;  %v4232_v56 = vld [vmem:[#allocation2 + $0x1a4] ss:$16 sps:$4 sm:$0xff]   ;;  %v4236_v58 = vld [vmem:[#allocation2 + $0x1a0] ss:$16 sps:$4 sm:$0xff]   ;;  %v4289_v27 = vld [vmem:[#allocation2 + $0xac] ss:$16 sps:$4 sm:$0xff]  }
  0x52   :  { %1694 = vmatprep.subr.bf16.mxu0 %v4198_v29  ;;  %1671 = vmatprep.mubr.bf16.mxu1 %v5022_v47  ;;  %v4234_v57 = vld [vmem:[#allocation2 + $0x3a4] ss:$16 sps:$4 sm:$0xff]   ;;  %v4237_v59 = vld [vmem:[#allocation2 + $0x3a0] ss:$16 sps:$4 sm:$0xff]   ;;  %v4287_v29 = vld [vmem:[#allocation2 + $0xa8] ss:$16 sps:$4 sm:$0xff]  }
  0x53   :  { %v4238_v60 = vld [vmem:[#allocation2 + $0x1c4] ss:$16 sps:$4 sm:$0xff]   ;;  %v4242_v62 = vld [vmem:[#allocation2 + $0x1c0] ss:$16 sps:$4 sm:$0xff]  }
  0x54   :  { %1654 = vmatpush1.bf16.msra.mxu1 %v4200_v30  ;;  %v4240_v61 = vld [vmem:[#allocation2 + $0x3c4] ss:$16 sps:$4 sm:$0xff]   ;;  %v4243_v63 = vld [vmem:[#allocation2 + $0x3c0] ss:$16 sps:$4 sm:$0xff]  }
  0x55   :  { %1695 = vmatpush1.bf16.msra.mxu0 %v4201_v31  ;;  %1655 = vmatprep.subr.bf16.mxu1 %v4202_v32  ;;  %v4244_v0 = vld [vmem:[#allocation2 + $0x1e4] ss:$16 sps:$4 sm:$0xff]   ;;  %v4248_v2 = vld [vmem:[#allocation2 + $0x1e0] ss:$16 sps:$4 sm:$0xff]   ;;  %v4295_v31 = vld [vmem:[#allocation2 + $0xcc] ss:$16 sps:$4 sm:$0xff]  }
  0x56   :  { %1696 = vmatprep.subr.bf16.mxu0 %v4204_v33  ;;  %v4246_v1 = vld [vmem:[#allocation2 + $0x3e4] ss:$16 sps:$4 sm:$0xff]   ;;  %v4249_v3 = vld [vmem:[#allocation2 + $0x3e0] ss:$16 sps:$4 sm:$0xff]  }
  0x57   :  { %v4256_v4 = vld [vmem:[#allocation2 + $0x404] ss:$16 sps:$4 sm:$0xff]   ;;  %v4254_v8 = vld [vmem:[#allocation2 + $0x400] ss:$16 sps:$4 sm:$0xff]  }
  0x58   :  { %1656 = vmatpush1.bf16.msra.mxu1 %v4206_v34  ;;  %v4262_v10 = vld [vmem:[#allocation2 + $0x424] ss:$16 sps:$4 sm:$0xff]   ;;  %v4260_v12 = vld [vmem:[#allocation2 + $0x420] ss:$16 sps:$4 sm:$0xff]  }
  0x59   :  { %1697 = vmatpush1.bf16.msra.mxu0 %v4207_v35  ;;  %1657 = vmatprep.subr.bf16.mxu1 %v4208_v36  ;;  %v4268_v14 = vld [vmem:[#allocation2 + $0x444] ss:$16 sps:$4 sm:$0xff]   ;;  %v4266_v16 = vld [vmem:[#allocation2 + $0x440] ss:$16 sps:$4 sm:$0xff]   ;;  %v4293_v35 = vld [vmem:[#allocation2 + $0xc8] ss:$16 sps:$4 sm:$0xff]  }
  0x5a   :  { %1698 = vmatprep.subr.bf16.mxu0 %v4210_v37  ;;  %v4274_v18 = vld [vmem:[#allocation2 + $0x464] ss:$16 sps:$4 sm:$0xff]   ;;  %v4272_v20 = vld [vmem:[#allocation2 + $0x460] ss:$16 sps:$4 sm:$0xff]   ;;  %v4301_v37 = vld [vmem:[#allocation2 + $0xec] ss:$16 sps:$4 sm:$0xff]  }
  0x5b   :  { %v4280_v22 = vld [vmem:[#allocation2 + $0x484] ss:$16 sps:$4 sm:$0xff]   ;;  %v4278_v24 = vld [vmem:[#allocation2 + $0x480] ss:$16 sps:$4 sm:$0xff]  }
  0x5c   :  { %1658 = vmatpush1.bf16.msra.mxu1 %v4212_v38  ;;  %v4286_v26 = vld [vmem:[#allocation2 + $0x4a4] ss:$16 sps:$4 sm:$0xff]   ;;  %v4284_v28 = vld [vmem:[#allocation2 + $0x4a0] ss:$16 sps:$4 sm:$0xff]  }
  0x5d   :  { %1699 = vmatpush1.bf16.msra.mxu0 %v4213_v39  ;;  %1659 = vmatprep.subr.bf16.mxu1 %v4214_v40  ;;  %v4292_v30 = vld [vmem:[#allocation2 + $0x4c4] ss:$16 sps:$4 sm:$0xff]   ;;  %v4290_v33 = vld [vmem:[#allocation2 + $0x4c0] ss:$16 sps:$4 sm:$0xff]   ;;  %v4299_v39 = vld [vmem:[#allocation2 + $0xe8] ss:$16 sps:$4 sm:$0xff]  }
  0x5e   :  { %1700 = vmatprep.subr.bf16.mxu0 %v4216_v41  ;;  %v5041_v32 = vld [vmem:[%s5166_s0 + $0x10] sm:$0xff]  ;;  %v4307_v41 = vld [vmem:[#allocation2 + $0x10c] ss:$16 sps:$4 sm:$0xff]  }
  0x5f   :  { %v5045_v34 = vcombine.high %v5041_v32, %v5041_v32  ;;  %v4298_v36 = vld [vmem:[#allocation2 + $0x4e4] ss:$16 sps:$4 sm:$0xff]   ;;  %v4296_v38 = vld [vmem:[#allocation2 + $0x4e0] ss:$16 sps:$4 sm:$0xff]  }
  0x60   :  { %1660 = vmatpush1.bf16.msra.mxu1 %v4218_v42  ;;  %v4304_v40 = vld [vmem:[#allocation2 + $0x504] ss:$16 sps:$4 sm:$0xff]   ;;  %v4302_v42 = vld [vmem:[#allocation2 + $0x500] ss:$16 sps:$4 sm:$0xff]  }
  0x61   :  { %1701 = vmatpush1.bf16.msra.mxu0 %v4219_v43  ;;  %1661 = vmatprep.subr.bf16.mxu1 %v4220_v44  ;;  %v4305_v43 = vld [vmem:[#allocation2 + $0x108] ss:$16 sps:$4 sm:$0xff]   ;;  %v4310_v44 = vld [vmem:[#allocation2 + $0x524] ss:$16 sps:$4 sm:$0xff]   ;;  %v4308_v46 = vld [vmem:[#allocation2 + $0x520] ss:$16 sps:$4 sm:$0xff]  }
  0x62   :  { %1702 = vmatprep.subr.bf16.mxu0 %v4222_v45  ;;  %v4313_v45 = vld [vmem:[#allocation2 + $0x12c] ss:$16 sps:$4 sm:$0xff]   ;;  %v4316_v48 = vld [vmem:[#allocation2 + $0x544] ss:$16 sps:$4 sm:$0xff]  }
  0x64   :  { %1662 = vmatpush1.bf16.msra.mxu1 %v4224_v49  ;;  %v4319_v49 = vld [vmem:[#allocation2 + $0x14c] ss:$16 sps:$4 sm:$0xff]  }
  0x65   :  { %1703 = vmatpush1.bf16.msra.mxu0 %v4225_v50  ;;  %1663 = vmatprep.subr.bf16.mxu1 %v4226_v52  ;;  %v4314_v50 = vld [vmem:[#allocation2 + $0x540] ss:$16 sps:$4 sm:$0xff]   ;;  %v4317_v52 = vld [vmem:[#allocation2 + $0x148] ss:$16 sps:$4 sm:$0xff]  }
  0x66   :  { %1704 = vmatprep.subr.bf16.mxu0 %v4228_v53  ;;  %v4322_v53 = vld [vmem:[#allocation2 + $0x564] ss:$16 sps:$4 sm:$0xff]  }
  0x68   :  { %1664 = vmatpush1.bf16.msra.mxu1 %v4230_v54  ;;  %v4325_v54 = vld [vmem:[#allocation2 + $0x16c] ss:$16 sps:$4 sm:$0xff]  }
  0x69   :  { %1705 = vmatpush1.bf16.msra.mxu0 %v4231_v55  ;;  %1665 = vmatprep.subr.bf16.mxu1 %v4232_v56  ;;  %v4320_v55 = vld [vmem:[#allocation2 + $0x560] ss:$16 sps:$4 sm:$0xff]   ;;  %v4323_v56 = vld [vmem:[#allocation2 + $0x168] ss:$16 sps:$4 sm:$0xff]  }
  0x6a   :  { %1706 = vmatprep.subr.bf16.mxu0 %v4234_v57  ;;  %v4328_v57 = vld [vmem:[#allocation2 + $0x584] ss:$16 sps:$4 sm:$0xff]  }
  0x6c   :  { %1666 = vmatpush1.bf16.msra.mxu1 %v4236_v58  ;;  %v4331_v58 = vld [vmem:[#allocation2 + $0x18c] ss:$16 sps:$4 sm:$0xff]  }
  0x6d   :  { %1707 = vmatpush1.bf16.msra.mxu0 %v4237_v59  ;;  %1667 = vmatprep.subr.bf16.mxu1 %v4238_v60  ;;  %v4326_v59 = vld [vmem:[#allocation2 + $0x580] ss:$16 sps:$4 sm:$0xff]   ;;  %v4329_v60 = vld [vmem:[#allocation2 + $0x188] ss:$16 sps:$4 sm:$0xff]  }
  0x6e   :  { %1708 = vmatprep.subr.bf16.mxu0 %v4240_v61  ;;  %v4334_v61 = vld [vmem:[#allocation2 + $0x5a4] ss:$16 sps:$4 sm:$0xff]  }
  0x70   :  { %1668 = vmatpush1.bf16.msra.mxu1 %v4242_v62  ;;  %v4337_v62 = vld [vmem:[#allocation2 + $0x1ac] ss:$16 sps:$4 sm:$0xff]  }
  0x71   :  { %1709 = vmatpush1.bf16.msra.mxu0 %v4243_v63  ;;  %1669 = vmatprep.subr.bf16.mxu1 %v4244_v0  ;;  %v4332_v63 = vld [vmem:[#allocation2 + $0x5a0] ss:$16 sps:$4 sm:$0xff]   ;;  %v4335_v0 = vld [vmem:[#allocation2 + $0x1a8] ss:$16 sps:$4 sm:$0xff]  }
  0x72   :  { %1710 = vmatprep.subr.bf16.mxu0 %v4246_v1  ;;  %v4340_v1 = vld [vmem:[#allocation2 + $0x5c4] ss:$16 sps:$4 sm:$0xff]  }
  0x74   :  { %1670 = vmatpush1.bf16.msra.mxu1 %v4248_v2  ;;  %v4343_v2 = vld [vmem:[#allocation2 + $0x1cc] ss:$16 sps:$4 sm:$0xff]  }
  0x75   :  { %1711 = vmatpush1.bf16.msra.mxu0 %v4249_v3  ;;  %1803 = vmatprep.subr.bf16.mxu1 %v4259_v5  ;;  %v4338_v3 = vld [vmem:[#allocation2 + $0x5c0] ss:$16 sps:$4 sm:$0xff]   ;;  %v4346_v5 = vld [vmem:[#allocation2 + $0x5e4] ss:$16 sps:$4 sm:$0xff]  }
  0x76   :  { %1721 = vmatprep.subr.bf16.mxu0 %v4256_v4  ;;  %v4341_v4 = vld [vmem:[#allocation2 + $0x1c8] ss:$16 sps:$4 sm:$0xff]  }
  0x77   :  { %1672 = vmatmul.mubr.bf16.vlgmr.msra.gmra.mrb[0].mxu1 %v5031_v6 }
  0x78   :  { %1713 = vmatmul.mubr.bf16.vlgmr.msra.gmra.mrb[0].mxu0 %v5033_v7  ;;  %1804 = vmatpush1.bf16.msra.mxu1 %v4257_v9  ;;  %v4344_v9 = vld [vmem:[#allocation2 + $0x5e0] ss:$16 sps:$4 sm:$0xff]  }
  0x79   :  { %1722 = vmatpush1.bf16.msra.mxu0 %v4254_v8  ;;  %1805 = vmatprep.subr.bf16.mxu1 %v4265_v11  ;;  %v4349_v8 = vld [vmem:[#allocation2 + $0x1ec] ss:$16 sps:$4 sm:$0xff]   ;;  %v4354_v11 = vld [vmem:[#allocation2 + $0x604] ss:$16 sps:$4 sm:$0xff]  }
  0x7a   :  { %1723 = vmatprep.subr.bf16.mxu0 %v4262_v10  ;;  %1835 = vmatprep.mubr.bf16.mxu1 %v5022_v47  ;;  %v4311_v47 = vld [vmem:[#allocation2 + $0x128] ss:$16 sps:$4 sm:$0xff]  }
  0x7b   :  { %1753 = vmatprep.mubr.bf16.mxu0 %v5045_v34  ;;  %v4347_v10 = vld [vmem:[#allocation2 + $0x1e8] ss:$16 sps:$4 sm:$0xff]  }
  0x7c   :  { %1806 = vmatpush1.bf16.msra.mxu1 %v4263_v13  ;;  %v5050_v13 = vcombine.low %v5041_v32, %v5041_v32  ;;  %v4379_v32 = vld [vmem:[#allocation2 + $0x288] ss:$16 sps:$4 sm:$0xff]  }
  0x7d   :  { %1724 = vmatpush1.bf16.msra.mxu0 %v4260_v12  ;;  %1807 = vmatprep.subr.bf16.mxu1 %v4271_v15  ;;  %v4357_v12 = vld [vmem:[#allocation2 + $0x20c] ss:$16 sps:$4 sm:$0xff]   ;;  %v4355_v15 = vld [vmem:[#allocation2 + $0x208] ss:$16 sps:$4 sm:$0xff]  }
  0x7e   :  { %1725 = vmatprep.subr.bf16.mxu0 %v4268_v14  ;;  %v4352_v14 = vld [vmem:[#allocation2 + $0x600] ss:$16 sps:$4 sm:$0xff]  }
  0x80   :  { %1808 = vmatpush1.bf16.msra.mxu1 %v4269_v17  ;;  %v4363_v17 = vld [vmem:[#allocation2 + $0x22c] ss:$16 sps:$4 sm:$0xff]  }
  0x81   :  { %1726 = vmatpush1.bf16.msra.mxu0 %v4266_v16  ;;  %1809 = vmatprep.subr.bf16.mxu1 %v4277_v19  ;;  %v4360_v16 = vld [vmem:[#allocation2 + $0x624] ss:$16 sps:$4 sm:$0xff]  }
  0x82   :  { %1727 = vmatprep.subr.bf16.mxu0 %v4274_v18  ;;  %v5055_v18 = vld [vmem:[%s5166_s0 + $0x18] sm:$0xff] }
  0x83   :  { %v5059_v19 = vcombine.high %v5055_v18, %v5055_v18 }
  0x84   :  { %1810 = vmatpush1.bf16.msra.mxu1 %v4275_v21  ;;  %v4361_v21 = vld [vmem:[#allocation2 + $0x228] ss:$16 sps:$4 sm:$0xff]  }
  0x85   :  { %1728 = vmatpush1.bf16.msra.mxu0 %v4272_v20  ;;  %1811 = vmatprep.subr.bf16.mxu1 %v4283_v23  ;;  %v4358_v20 = vld [vmem:[#allocation2 + $0x620] ss:$16 sps:$4 sm:$0xff]   ;;  %v4369_v23 = vld [vmem:[#allocation2 + $0x24c] ss:$16 sps:$4 sm:$0xff]  }
  0x86   :  { %1729 = vmatprep.subr.bf16.mxu0 %v4280_v22  ;;  %v4366_v22 = vld [vmem:[#allocation2 + $0x644] ss:$16 sps:$4 sm:$0xff]  }
  0x88   :  { %1812 = vmatpush1.bf16.msra.mxu1 %v4281_v25  ;;  %v4367_v25 = vld [vmem:[#allocation2 + $0x248] ss:$16 sps:$4 sm:$0xff]  }
  0x89   :  { %1730 = vmatpush1.bf16.msra.mxu0 %v4278_v24  ;;  %1813 = vmatprep.subr.bf16.mxu1 %v4289_v27  ;;  %v4364_v24 = vld [vmem:[#allocation2 + $0x640] ss:$16 sps:$4 sm:$0xff]  }
  0x8a   :  { %1731 = vmatprep.subr.bf16.mxu0 %v4286_v26  ;;  %v4372_v26 = vld [vmem:[#allocation2 + $0x664] ss:$16 sps:$4 sm:$0xff]   ;;  %v4370_v27 = vld [vmem:[#allocation2 + $0x660] ss:$16 sps:$4 sm:$0xff]  }
  0x8c   :  { %1814 = vmatpush1.bf16.msra.mxu1 %v4287_v29  ;;  %v4378_v29 = vld [vmem:[#allocation2 + $0x684] ss:$16 sps:$4 sm:$0xff]  }
  0x8d   :  { %1732 = vmatpush1.bf16.msra.mxu0 %v4284_v28  ;;  %1815 = vmatprep.subr.bf16.mxu1 %v4295_v31  ;;  %v4373_v28 = vld [vmem:[#allocation2 + $0x268] ss:$16 sps:$4 sm:$0xff]   ;;  %v4376_v31 = vld [vmem:[#allocation2 + $0x680] ss:$16 sps:$4 sm:$0xff]  }
  0x8e   :  { %1733 = vmatprep.subr.bf16.mxu0 %v4292_v30  ;;  %v4381_v30 = vld [vmem:[#allocation2 + $0x28c] ss:$16 sps:$4 sm:$0xff]  }
  0x90   :  { %1816 = vmatpush1.bf16.msra.mxu1 %v4293_v35  ;;  %v4382_v35 = vld [vmem:[#allocation2 + $0x6a0] ss:$16 sps:$4 sm:$0xff]  }
  0x91   :  { %1734 = vmatpush1.bf16.msra.mxu0 %v4290_v33  ;;  %1817 = vmatprep.subr.bf16.mxu1 %v4301_v37  ;;  %v4387_v33 = vld [vmem:[#allocation2 + $0x2ac] ss:$16 sps:$4 sm:$0xff]   ;;  %v4390_v37 = vld [vmem:[#allocation2 + $0x6c4] ss:$16 sps:$4 sm:$0xff]  }
  0x92   :  { %1735 = vmatprep.subr.bf16.mxu0 %v4298_v36  ;;  %v4385_v36 = vld [vmem:[#allocation2 + $0x2a8] ss:$16 sps:$4 sm:$0xff]  }
  0x94   :  { %1818 = vmatpush1.bf16.msra.mxu1 %v4299_v39  ;;  %v4388_v39 = vld [vmem:[#allocation2 + $0x6c0] ss:$16 sps:$4 sm:$0xff]  }
  0x95   :  { %1736 = vmatpush1.bf16.msra.mxu0 %v4296_v38  ;;  %1819 = vmatprep.subr.bf16.mxu1 %v4307_v41  ;;  %v4393_v38 = vld [vmem:[#allocation2 + $0x2cc] ss:$16 sps:$4 sm:$0xff]   ;;  %v4396_v41 = vld [vmem:[#allocation2 + $0x6e4] ss:$16 sps:$4 sm:$0xff]  }
  0x96   :  { %1737 = vmatprep.subr.bf16.mxu0 %v4304_v40  ;;  %v4391_v40 = vld [vmem:[#allocation2 + $0x2c8] ss:$16 sps:$4 sm:$0xff]  }
  0x98   :  { %1820 = vmatpush1.bf16.msra.mxu1 %v4305_v43  ;;  %v4394_v43 = vld [vmem:[#allocation2 + $0x6e0] ss:$16 sps:$4 sm:$0xff]  }
  0x99   :  { %1738 = vmatpush1.bf16.msra.mxu0 %v4302_v42  ;;  %1821 = vmatprep.subr.bf16.mxu1 %v4313_v45  ;;  %v4399_v42 = vld [vmem:[#allocation2 + $0x2ec] ss:$16 sps:$4 sm:$0xff]   ;;  %v4402_v45 = vld [vmem:[#allocation2 + $0x704] ss:$16 sps:$4 sm:$0xff]  }
  0x9a   :  { %1739 = vmatprep.subr.bf16.mxu0 %v4310_v44  ;;  %v4397_v44 = vld [vmem:[#allocation2 + $0x2e8] ss:$16 sps:$4 sm:$0xff]  }
  0x9c   :  { %1822 = vmatpush1.bf16.msra.mxu1 %v4311_v47  ;;  %v4400_v47 = vld [vmem:[#allocation2 + $0x700] ss:$16 sps:$4 sm:$0xff]  }
  0x9d   :  { %1740 = vmatpush1.bf16.msra.mxu0 %v4308_v46  ;;  %1823 = vmatprep.subr.bf16.mxu1 %v4319_v49  ;;  %v4405_v46 = vld [vmem:[#allocation2 + $0x30c] ss:$16 sps:$4 sm:$0xff]   ;;  %v4408_v49 = vld [vmem:[#allocation2 + $0x724] ss:$16 sps:$4 sm:$0xff]  }
  0x9e   :  { %1741 = vmatprep.subr.bf16.mxu0 %v4316_v48  ;;  %v4403_v48 = vld [vmem:[#allocation2 + $0x308] ss:$16 sps:$4 sm:$0xff]  }
  0xa0   :  { %1824 = vmatpush1.bf16.msra.mxu1 %v4317_v52  ;;  %v4406_v52 = vld [vmem:[#allocation2 + $0x720] ss:$16 sps:$4 sm:$0xff]  }
  0xa1   :  { %1742 = vmatpush1.bf16.msra.mxu0 %v4314_v50  ;;  %1825 = vmatprep.subr.bf16.mxu1 %v4325_v54  ;;  %v4411_v50 = vld [vmem:[#allocation2 + $0x32c] ss:$16 sps:$4 sm:$0xff]   ;;  %v4414_v54 = vld [vmem:[#allocation2 + $0x744] ss:$16 sps:$4 sm:$0xff]  }
  0xa2   :  { %1743 = vmatprep.subr.bf16.mxu0 %v4322_v53  ;;  %v4409_v53 = vld [vmem:[#allocation2 + $0x328] ss:$16 sps:$4 sm:$0xff]  }
  0xa4   :  { %1826 = vmatpush1.bf16.msra.mxu1 %v4323_v56  ;;  %v4412_v56 = vld [vmem:[#allocation2 + $0x740] ss:$16 sps:$4 sm:$0xff]  }
  0xa5   :  { %1744 = vmatpush1.bf16.msra.mxu0 %v4320_v55  ;;  %1827 = vmatprep.subr.bf16.mxu1 %v4331_v58  ;;  %v4417_v55 = vld [vmem:[#allocation2 + $0x34c] ss:$16 sps:$4 sm:$0xff]   ;;  %v4420_v58 = vld [vmem:[#allocation2 + $0x764] ss:$16 sps:$4 sm:$0xff]  }
  0xa6   :  { %1745 = vmatprep.subr.bf16.mxu0 %v4328_v57  ;;  %v4415_v57 = vld [vmem:[#allocation2 + $0x348] ss:$16 sps:$4 sm:$0xff]  }
  0xa8   :  { %1828 = vmatpush1.bf16.msra.mxu1 %v4329_v60  ;;  %v4418_v60 = vld [vmem:[#allocation2 + $0x760] ss:$16 sps:$4 sm:$0xff]  }
  0xa9   :  { %1746 = vmatpush1.bf16.msra.mxu0 %v4326_v59  ;;  %1829 = vmatprep.subr.bf16.mxu1 %v4337_v62  ;;  %v4423_v59 = vld [vmem:[#allocation2 + $0x36c] ss:$16 sps:$4 sm:$0xff]   ;;  %v4426_v62 = vld [vmem:[#allocation2 + $0x784] ss:$16 sps:$4 sm:$0xff]  }
  0xaa   :  { %1747 = vmatprep.subr.bf16.mxu0 %v4334_v61  ;;  %v4421_v61 = vld [vmem:[#allocation2 + $0x368] ss:$16 sps:$4 sm:$0xff]  }
  0xac   :  { %1830 = vmatpush1.bf16.msra.mxu1 %v4335_v0  ;;  %v4424_v0 = vld [vmem:[#allocation2 + $0x780] ss:$16 sps:$4 sm:$0xff]  }
  0xad   :  { %1748 = vmatpush1.bf16.msra.mxu0 %v4332_v63  ;;  %1831 = vmatprep.subr.bf16.mxu1 %v4343_v2  ;;  %v4429_v63 = vld [vmem:[#allocation2 + $0x38c] ss:$16 sps:$4 sm:$0xff]   ;;  %v4432_v2 = vld [vmem:[#allocation2 + $0x7a4] ss:$16 sps:$4 sm:$0xff]  }
  0xae   :  { %1749 = vmatprep.subr.bf16.mxu0 %v4340_v1  ;;  %v4427_v1 = vld [vmem:[#allocation2 + $0x388] ss:$16 sps:$4 sm:$0xff]  }
  0xb0   :  { %1832 = vmatpush1.bf16.msra.mxu1 %v4341_v4  ;;  %v4430_v4 = vld [vmem:[#allocation2 + $0x7a0] ss:$16 sps:$4 sm:$0xff]  }
  0xb1   :  { %1750 = vmatpush1.bf16.msra.mxu0 %v4338_v3  ;;  %1833 = vmatprep.subr.bf16.mxu1 %v4349_v8  ;;  %v4435_v3 = vld [vmem:[#allocation2 + $0x3ac] ss:$16 sps:$4 sm:$0xff]   ;;  %v4438_v8 = vld [vmem:[#allocation2 + $0x7c4] ss:$16 sps:$4 sm:$0xff]  }
  0xb2   :  { %1751 = vmatprep.subr.bf16.mxu0 %v4346_v5  ;;  %v4433_v5 = vld [vmem:[#allocation2 + $0x3a8] ss:$16 sps:$4 sm:$0xff]  }
  0xb4   :  { %1834 = vmatpush1.bf16.msra.mxu1 %v4347_v10  ;;  %v4436_v10 = vld [vmem:[#allocation2 + $0x7c0] ss:$16 sps:$4 sm:$0xff]  }
  0xb5   :  { %1752 = vmatpush1.bf16.msra.mxu0 %v4344_v9  ;;  %1844 = vmatprep.subr.bf16.mxu1 %v4357_v12  ;;  %v4441_v9 = vld [vmem:[#allocation2 + $0x3cc] ss:$16 sps:$4 sm:$0xff]   ;;  %v4444_v12 = vld [vmem:[#allocation2 + $0x7e4] ss:$16 sps:$4 sm:$0xff]  }
  0xb6   :  { %1762 = vmatprep.subr.bf16.mxu0 %v4354_v11  ;;  %v4439_v11 = vld [vmem:[#allocation2 + $0x3c8] ss:$16 sps:$4 sm:$0xff]  }
  0xb7   :  { %1836 = vmatmul.mubr.bf16.vlgmr.msra.gmra.mrb[4].mxu1 %v5031_v6  ;;  %v4375_v6 = vld [vmem:[#allocation2 + $0x26c] ss:$16 sps:$4 sm:$0xff]  }
  0xb8   :  { %1754 = vmatmul.mubr.bf16.vlgmr.msra.gmra.mrb[0].mxu0 %v5050_v13  ;;  %1845 = vmatpush1.bf16.msra.mxu1 %v4355_v15  ;;  %v4442_v15 = vld [vmem:[#allocation2 + $0x7e0] ss:$16 sps:$4 sm:$0xff]  }
  0xb9   :  { %1763 = vmatpush1.bf16.msra.mxu0 %v4352_v14  ;;  %1846 = vmatprep.subr.bf16.mxu1 %v4363_v17  ;;  %v4447_v14 = vld [vmem:[#allocation2 + $0x3ec] ss:$16 sps:$4 sm:$0xff]  }
  0xba   :  { %1764 = vmatprep.subr.bf16.mxu0 %v4360_v16  ;;  %1794 = vmatprep.mubr.bf16.mxu0 %v5059_v19  ;;  %v4445_v16 = vld [vmem:[#allocation2 + $0x3e8] ss:$16 sps:$4 sm:$0xff]   ;;  %v4452_v17 = vld [vmem:[#allocation2 + $0x40c] ss:$16 sps:$4 sm:$0xff]  }
  0xbb   :  { %1876 = vmatprep.mubr.bf16.mxu1 %v5027_v51  ;;  %v4384_v51 = vld [vmem:[#allocation2 + $0x6a4] ss:$16 sps:$4 sm:$0xff]  }
  0xbc   :  { %1847 = vmatpush1.bf16.msra.mxu1 %v4361_v21  ;;  %v5067_v21 = vcombine.low %v5055_v18, %v5055_v18  ;;  %v4552_v18 = vld [vmem:[#allocation4 + $0x20] ss:$16 sps:$4 sm:$0xff]  }
  0xbd   :  { %1765 = vmatpush1.bf16.msra.mxu0 %v4358_v20  ;;  %1848 = vmatprep.subr.bf16.mxu1 %v4369_v23  ;;  %v4450_v20 = vld [vmem:[#allocation2 + $0x408] ss:$16 sps:$4 sm:$0xff]   ;;  %v4546_v23 = vld [vmem:[#allocation4] ss:$16 sps:$4 sm:$0xff]  }
  0xbe   :  { %1766 = vmatprep.subr.bf16.mxu0 %v4366_v22  ;;  %v4455_v22 = vld [vmem:[#allocation2 + $0x42c] ss:$16 sps:$4 sm:$0xff]  }
  0xc0   :  { %1849 = vmatpush1.bf16.msra.mxu1 %v4367_v25  ;;  %v4453_v25 = vld [vmem:[#allocation2 + $0x428] ss:$16 sps:$4 sm:$0xff]  }
  0xc1   :  { %1767 = vmatpush1.bf16.msra.mxu0 %v4364_v24  ;;  %1850 = vmatprep.subr.bf16.mxu1 %v4375_v6  ;;  %v4548_v24 = vld [vmem:[#allocation4 + $0x4] ss:$16 sps:$4 sm:$0xff]   ;;  %v4458_v6 = vld [vmem:[#allocation2 + $0x44c] ss:$16 sps:$4 sm:$0xff]  }
  0xc2   :  { %1768 = vmatprep.subr.bf16.mxu0 %v4372_v26  ;;  %v4554_v26 = vld [vmem:[#allocation4 + $0x24] ss:$16 sps:$4 sm:$0xff]  }
  0xc4   :  { %1851 = vmatpush1.bf16.msra.mxu1 %v4373_v28  ;;  %v4461_v28 = vld [vmem:[#allocation2 + $0x46c] ss:$16 sps:$4 sm:$0xff]  }
  0xc5   :  { %1769 = vmatpush1.bf16.msra.mxu0 %v4370_v27  ;;  %1852 = vmatprep.subr.bf16.mxu1 %v4381_v30  ;;  %v4456_v27 = vld [vmem:[#allocation2 + $0x448] ss:$16 sps:$4 sm:$0xff]   ;;  %v4558_v30 = vld [vmem:[#allocation4 + $0x40] ss:$16 sps:$4 sm:$0xff]  }
  0xc6   :  { %1770 = vmatprep.subr.bf16.mxu0 %v4378_v29  ;;  %v4560_v29 = vld [vmem:[#allocation4 + $0x44] ss:$16 sps:$4 sm:$0xff]  }
  0xc8   :  { %1853 = vmatpush1.bf16.msra.mxu1 %v4379_v32  ;;  %v4566_v32 = vld [vmem:[#allocation4 + $0x64] ss:$16 sps:$4 sm:$0xff]  }
  0xc9   :  { %1771 = vmatpush1.bf16.msra.mxu0 %v4376_v31  ;;  %1854 = vmatprep.subr.bf16.mxu1 %v4387_v33  ;;  %v4464_v31 = vld [vmem:[#allocation2 + $0x48c] ss:$16 sps:$4 sm:$0xff]  }
  0xca   :  { %1772 = vmatprep.subr.bf16.mxu0 %v4384_v51  ;;  %v4462_v51 = vld [vmem:[#allocation2 + $0x488] ss:$16 sps:$4 sm:$0xff]   ;;  %v4467_v33 = vld [vmem:[#allocation2 + $0x4ac] ss:$16 sps:$4 sm:$0xff]  }
  0xcc   :  { %1855 = vmatpush1.bf16.msra.mxu1 %v4385_v36  ;;  %v4570_v36 = vld [vmem:[#allocation4 + $0x80] ss:$16 sps:$4 sm:$0xff]  }
  0xcd   :  { %1773 = vmatpush1.bf16.msra.mxu0 %v4382_v35  ;;  %1856 = vmatprep.subr.bf16.mxu1 %v4393_v38  ;;  %v4572_v35 = vld [vmem:[#allocation4 + $0x84] ss:$16 sps:$4 sm:$0xff]   ;;  %v4470_v38 = vld [vmem:[#allocation2 + $0x4cc] ss:$16 sps:$4 sm:$0xff]  }
  0xce   :  { %1774 = vmatprep.subr.bf16.mxu0 %v4390_v37  ;;  %v4465_v37 = vld [vmem:[#allocation2 + $0x4a8] ss:$16 sps:$4 sm:$0xff]  }
  0xd0   :  { %1857 = vmatpush1.bf16.msra.mxu1 %v4391_v40  ;;  %v4576_v40 = vld [vmem:[#allocation4 + $0xa0] ss:$16 sps:$4 sm:$0xff]  }
  0xd1   :  { %1775 = vmatpush1.bf16.msra.mxu0 %v4388_v39  ;;  %1858 = vmatprep.subr.bf16.mxu1 %v4399_v42  ;;  %v4578_v39 = vld [vmem:[#allocation4 + $0xa4] ss:$16 sps:$4 sm:$0xff]   ;;  %v4473_v42 = vld [vmem:[#allocation2 + $0x4ec] ss:$16 sps:$4 sm:$0xff]  }
  0xd2   :  { %1776 = vmatprep.subr.bf16.mxu0 %v4396_v41  ;;  %v4468_v41 = vld [vmem:[#allocation2 + $0x4c8] ss:$16 sps:$4 sm:$0xff]  }
  0xd4   :  { %1859 = vmatpush1.bf16.msra.mxu1 %v4397_v44  ;;  %v4582_v44 = vld [vmem:[#allocation4 + $0xc0] ss:$16 sps:$4 sm:$0xff]  }
  0xd5   :  { %1777 = vmatpush1.bf16.msra.mxu0 %v4394_v43  ;;  %1860 = vmatprep.subr.bf16.mxu1 %v4405_v46  ;;  %v4584_v43 = vld [vmem:[#allocation4 + $0xc4] ss:$16 sps:$4 sm:$0xff]   ;;  %v4476_v46 = vld [vmem:[#allocation2 + $0x50c] ss:$16 sps:$4 sm:$0xff]  }
  0xd6   :  { %1778 = vmatprep.subr.bf16.mxu0 %v4402_v45  ;;  %v4471_v45 = vld [vmem:[#allocation2 + $0x4e8] ss:$16 sps:$4 sm:$0xff]  }
  0xd8   :  { %1861 = vmatpush1.bf16.msra.mxu1 %v4403_v48  ;;  %v4588_v48 = vld [vmem:[#allocation4 + $0xe0] ss:$16 sps:$4 sm:$0xff]  }
  0xd9   :  { %1779 = vmatpush1.bf16.msra.mxu0 %v4400_v47  ;;  %1862 = vmatprep.subr.bf16.mxu1 %v4411_v50  ;;  %v4590_v47 = vld [vmem:[#allocation4 + $0xe4] ss:$16 sps:$4 sm:$0xff]   ;;  %v4479_v50 = vld [vmem:[#allocation2 + $0x52c] ss:$16 sps:$4 sm:$0xff]  }
  0xda   :  { %1780 = vmatprep.subr.bf16.mxu0 %v4408_v49  ;;  %v4474_v49 = vld [vmem:[#allocation2 + $0x508] ss:$16 sps:$4 sm:$0xff]  }
  0xdc   :  { %1863 = vmatpush1.bf16.msra.mxu1 %v4409_v53  ;;  %v4594_v53 = vld [vmem:[#allocation4 + $0x100] ss:$16 sps:$4 sm:$0xff]  }
  0xdd   :  { %1781 = vmatpush1.bf16.msra.mxu0 %v4406_v52  ;;  %1864 = vmatprep.subr.bf16.mxu1 %v4417_v55  ;;  %v4596_v52 = vld [vmem:[#allocation4 + $0x104] ss:$16 sps:$4 sm:$0xff]   ;;  %v4482_v55 = vld [vmem:[#allocation2 + $0x54c] ss:$16 sps:$4 sm:$0xff]  }
  0xde   :  { %1782 = vmatprep.subr.bf16.mxu0 %v4414_v54  ;;  %v4477_v54 = vld [vmem:[#allocation2 + $0x528] ss:$16 sps:$4 sm:$0xff]  }
  0xe0   :  { %1865 = vmatpush1.bf16.msra.mxu1 %v4415_v57  ;;  %v4600_v57 = vld [vmem:[#allocation4 + $0x120] ss:$16 sps:$4 sm:$0xff]  }
  0xe1   :  { %1783 = vmatpush1.bf16.msra.mxu0 %v4412_v56  ;;  %1866 = vmatprep.subr.bf16.mxu1 %v4423_v59  ;;  %v4602_v56 = vld [vmem:[#allocation4 + $0x124] ss:$16 sps:$4 sm:$0xff]   ;;  %v4485_v59 = vld [vmem:[#allocation2 + $0x56c] ss:$16 sps:$4 sm:$0xff]  }
  0xe2   :  { %1784 = vmatprep.subr.bf16.mxu0 %v4420_v58  ;;  %v4480_v58 = vld [vmem:[#allocation2 + $0x548] ss:$16 sps:$4 sm:$0xff]  }
  0xe4   :  { %1867 = vmatpush1.bf16.msra.mxu1 %v4421_v61  ;;  %v4606_v61 = vld [vmem:[#allocation4 + $0x140] ss:$16 sps:$4 sm:$0xff]  }
  0xe5   :  { %1785 = vmatpush1.bf16.msra.mxu0 %v4418_v60  ;;  %1868 = vmatprep.subr.bf16.mxu1 %v4429_v63  ;;  %v4608_v60 = vld [vmem:[#allocation4 + $0x144] ss:$16 sps:$4 sm:$0xff]   ;;  %v4488_v63 = vld [vmem:[#allocation2 + $0x58c] ss:$16 sps:$4 sm:$0xff]  }
  0xe6   :  { %1786 = vmatprep.subr.bf16.mxu0 %v4426_v62  ;;  %v4483_v62 = vld [vmem:[#allocation2 + $0x568] ss:$16 sps:$4 sm:$0xff]  }
  0xe8   :  { %1869 = vmatpush1.bf16.msra.mxu1 %v4427_v1  ;;  %v4612_v1 = vld [vmem:[#allocation4 + $0x160] ss:$16 sps:$4 sm:$0xff]  }
  0xe9   :  { %1787 = vmatpush1.bf16.msra.mxu0 %v4424_v0  ;;  %1870 = vmatprep.subr.bf16.mxu1 %v4435_v3  ;;  %v4614_v0 = vld [vmem:[#allocation4 + $0x164] ss:$16 sps:$4 sm:$0xff]   ;;  %v4491_v3 = vld [vmem:[#allocation2 + $0x5ac] ss:$16 sps:$4 sm:$0xff]  }
  0xea   :  { %1788 = vmatprep.subr.bf16.mxu0 %v4432_v2  ;;  %v4486_v2 = vld [vmem:[#allocation2 + $0x588] ss:$16 sps:$4 sm:$0xff]  }
  0xec   :  { %1871 = vmatpush1.bf16.msra.mxu1 %v4433_v5  ;;  %v4618_v5 = vld [vmem:[#allocation4 + $0x180] ss:$16 sps:$4 sm:$0xff]  }
  0xed   :  { %1789 = vmatpush1.bf16.msra.mxu0 %v4430_v4  ;;  %1872 = vmatprep.subr.bf16.mxu1 %v4441_v9  ;;  %v4620_v4 = vld [vmem:[#allocation4 + $0x184] ss:$16 sps:$4 sm:$0xff]   ;;  %v4494_v9 = vld [vmem:[#allocation2 + $0x5cc] ss:$16 sps:$4 sm:$0xff]  }
  0xee   :  { %1790 = vmatprep.subr.bf16.mxu0 %v4438_v8  ;;  %v4489_v8 = vld [vmem:[#allocation2 + $0x5a8] ss:$16 sps:$4 sm:$0xff]  }
  0xf0   :  { %1873 = vmatpush1.bf16.msra.mxu1 %v4439_v11  ;;  %v4624_v11 = vld [vmem:[#allocation4 + $0x1a0] ss:$16 sps:$4 sm:$0xff]  }
  0xf1   :  { %1791 = vmatpush1.bf16.msra.mxu0 %v4436_v10  ;;  %1874 = vmatprep.subr.bf16.mxu1 %v4447_v14  ;;  %v4626_v10 = vld [vmem:[#allocation4 + $0x1a4] ss:$16 sps:$4 sm:$0xff]   ;;  %v4497_v14 = vld [vmem:[#allocation2 + $0x5ec] ss:$16 sps:$4 sm:$0xff]  }
  0xf2   :  { %1792 = vmatprep.subr.bf16.mxu0 %v4444_v12  ;;  %v4492_v12 = vld [vmem:[#allocation2 + $0x5c8] ss:$16 sps:$4 sm:$0xff]  }
  0xf4   :  { %1875 = vmatpush1.bf16.msra.mxu1 %v4445_v16  ;;  %v4630_v16 = vld [vmem:[#allocation4 + $0x1c0] ss:$16 sps:$4 sm:$0xff]  }
  0xf5   :  { %1793 = vmatpush1.bf16.msra.mxu0 %v4442_v15  ;;  %1885 = vmatprep.subr.bf16.mxu1 %v4452_v17  ;;  %v4632_v15 = vld [vmem:[#allocation4 + $0x1c4] ss:$16 sps:$4 sm:$0xff]   ;;  %v4495_v17 = vld [vmem:[#allocation2 + $0x5e8] ss:$16 sps:$4 sm:$0xff]  }
  0xf6   :  { %2761 = vmatprep.subr.bf16.mxu0 %v4548_v24  ;;  %v4501_v24 = vld [vmem:[#allocation2 + $0x628] ss:$16 sps:$4 sm:$0xff]  }
  0xf7   :  { %1877 = vmatmul.mubr.bf16.vlgmr.msra.gmra.mrb[4].mxu1 %v5033_v7  ;;  %v4459_v7 = vld [vmem:[#allocation2 + $0x468] ss:$16 sps:$4 sm:$0xff]  }
  0xf8   :  { %1795 = vmatmul.mubr.bf16.vlgmr.msra.gmra.mrb[0].mxu0 %v5067_v21  ;;  %1886 = vmatpush1.bf16.msra.mxu1 %v4450_v20  ;;  %v4500_v20 = vld [vmem:[#allocation2 + $0x60c] ss:$16 sps:$4 sm:$0xff]  }
  0xf9   :  { %1917 = vmatprep.mubr.bf16.mxu1 %v5045_v34  ;;  %1887 = vmatprep.subr.bf16.mxu1 %v4455_v22  ;;  %v4564_v34 = vld [vmem:[#allocation4 + $0x60] ss:$16 sps:$4 sm:$0xff]   ;;  %v4498_v22 = vld [vmem:[#allocation2 + $0x608] ss:$16 sps:$4 sm:$0xff]  }
  0xfa   :  { %2762 = vmatpush1.bf16.msra.mxu0 %v4546_v23  ;;  %v4503_v23 = vld [vmem:[#allocation2 + $0x62c] ss:$16 sps:$4 sm:$0xff]  }
  0xfb   :  { %2763 = vmatprep.subr.bf16.mxu0 %v4554_v26  ;;  %v4504_v26 = vld [vmem:[#allocation2 + $0x648] ss:$16 sps:$4 sm:$0xff]  }
  0xfc   :  { %1888 = vmatpush1.bf16.msra.mxu1 %v4453_v25  ;;  %v4506_v25 = vld [vmem:[#allocation2 + $0x64c] ss:$16 sps:$4 sm:$0xff]  }
  0xfd   :  { %1889 = vmatprep.subr.bf16.mxu1 %v4458_v6  ;;  %v4509_v6 = vld [vmem:[#allocation2 + $0x66c] ss:$16 sps:$4 sm:$0xff]  }
  0xfe   :  { %2764 = vmatpush1.bf16.msra.mxu0 %v4552_v18  ;;  %v4507_v18 = vld [vmem:[#allocation2 + $0x668] ss:$16 sps:$4 sm:$0xff]  }
  0xff   :  { %2765 = vmatprep.subr.bf16.mxu0 %v4560_v29  ;;  %v4515_v29 = vld [vmem:[#allocation2 + $0x6ac] ss:$16 sps:$4 sm:$0xff]  }
 0x100   :  { %1890 = vmatpush1.bf16.msra.mxu1 %v4456_v27  ;;  %v4512_v27 = vld [vmem:[#allocation2 + $0x68c] ss:$16 sps:$4 sm:$0xff]  }
 0x101   :  { %1891 = vmatprep.subr.bf16.mxu1 %v4461_v28  ;;  %v4510_v28 = vld [vmem:[#allocation2 + $0x688] ss:$16 sps:$4 sm:$0xff]  }
 0x102   :  { %2766 = vmatpush1.bf16.msra.mxu0 %v4558_v30  ;;  %v4513_v30 = vld [vmem:[#allocation2 + $0x6a8] ss:$16 sps:$4 sm:$0xff]  }
 0x103   :  { %2767 = vmatprep.subr.bf16.mxu0 %v4566_v32 }
 0x104   :  { %1892 = vmatpush1.bf16.msra.mxu1 %v4459_v7 }
 0x105   :  { %1893 = vmatprep.subr.bf16.mxu1 %v4464_v31  ;;  %v4638_v31 = vld [vmem:[#allocation4 + $0x1e4] ss:$16 sps:$4 sm:$0xff]  }
 0x106   :  { %2768 = vmatpush1.bf16.msra.mxu0 %v4564_v34  ;;  %v4516_v34 = vld [vmem:[#allocation2 + $0x6c8] ss:$16 sps:$4 sm:$0xff]  }
 0x107   :  { %2769 = vmatprep.subr.bf16.mxu0 %v4572_v35  ;;  %v4521_v35 = vld [vmem:[#allocation2 + $0x6ec] ss:$16 sps:$4 sm:$0xff]  }
 0x108   :  { %1894 = vmatpush1.bf16.msra.mxu1 %v4462_v51  ;;  %v4636_v51 = vld [vmem:[#allocation4 + $0x1e0] ss:$16 sps:$4 sm:$0xff]  }
 0x109   :  { %1895 = vmatprep.subr.bf16.mxu1 %v4467_v33 }
 0x10a   :  { %2770 = vmatpush1.bf16.msra.mxu0 %v4570_v36  ;;  %v4519_v36 = vld [vmem:[#allocation2 + $0x6e8] ss:$16 sps:$4 sm:$0xff]  }
 0x10b   :  { %2771 = vmatprep.subr.bf16.mxu0 %v4578_v39  ;;  %v4522_v39 = vld [vmem:[#allocation2 + $0x708] ss:$16 sps:$4 sm:$0xff]  }
 0x10c   :  { %1896 = vmatpush1.bf16.msra.mxu1 %v4465_v37  ;;  %v4524_v37 = vld [vmem:[#allocation2 + $0x70c] ss:$16 sps:$4 sm:$0xff]  }
 0x10d   :  { %1897 = vmatprep.subr.bf16.mxu1 %v4470_v38  ;;  %v4644_v38 = vld [vmem:[#allocation4 + $0x204] ss:$16 sps:$4 sm:$0xff]  }
 0x10e   :  { %2772 = vmatpush1.bf16.msra.mxu0 %v4576_v40  ;;  %v4527_v40 = vld [vmem:[#allocation2 + $0x72c] ss:$16 sps:$4 sm:$0xff]  }
 0x10f   :  { %2773 = vmatprep.subr.bf16.mxu0 %v4584_v43  ;;  %v4528_v43 = vld [vmem:[#allocation2 + $0x748] ss:$16 sps:$4 sm:$0xff]  }
 0x110   :  { %1898 = vmatpush1.bf16.msra.mxu1 %v4468_v41  ;;  %v4525_v41 = vld [vmem:[#allocation2 + $0x728] ss:$16 sps:$4 sm:$0xff]  }
 0x111   :  { %1899 = vmatprep.subr.bf16.mxu1 %v4473_v42  ;;  %v4530_v42 = vld [vmem:[#allocation2 + $0x74c] ss:$16 sps:$4 sm:$0xff]  }
 0x112   :  { %2774 = vmatpush1.bf16.msra.mxu0 %v4582_v44  ;;  %v4533_v44 = vld [vmem:[#allocation2 + $0x76c] ss:$16 sps:$4 sm:$0xff]  }
 0x113   :  { %2775 = vmatprep.subr.bf16.mxu0 %v4590_v47  ;;  %v4534_v47 = vld [vmem:[#allocation2 + $0x788] ss:$16 sps:$4 sm:$0xff]  }
 0x114   :  { %1900 = vmatpush1.bf16.msra.mxu1 %v4471_v45  ;;  %v4531_v45 = vld [vmem:[#allocation2 + $0x768] ss:$16 sps:$4 sm:$0xff]  }
 0x115   :  { %1901 = vmatprep.subr.bf16.mxu1 %v4476_v46  ;;  %v4536_v46 = vld [vmem:[#allocation2 + $0x78c] ss:$16 sps:$4 sm:$0xff]  }
 0x116   :  { %2776 = vmatpush1.bf16.msra.mxu0 %v4588_v48  ;;  %v4539_v48 = vld [vmem:[#allocation2 + $0x7ac] ss:$16 sps:$4 sm:$0xff]  }
 0x117   :  { %2777 = vmatprep.subr.bf16.mxu0 %v4596_v52  ;;  %v4540_v52 = vld [vmem:[#allocation2 + $0x7c8] ss:$16 sps:$4 sm:$0xff]  }
 0x118   :  { %1902 = vmatpush1.bf16.msra.mxu1 %v4474_v49  ;;  %v4537_v49 = vld [vmem:[#allocation2 + $0x7a8] ss:$16 sps:$4 sm:$0xff]  }
 0x119   :  { %1903 = vmatprep.subr.bf16.mxu1 %v4479_v50  ;;  %v4542_v50 = vld [vmem:[#allocation2 + $0x7cc] ss:$16 sps:$4 sm:$0xff]  }
 0x11a   :  { %2778 = vmatpush1.bf16.msra.mxu0 %v4594_v53  ;;  %v4545_v53 = vld [vmem:[#allocation2 + $0x7ec] ss:$16 sps:$4 sm:$0xff]  }
 0x11b   :  { %2779 = vmatprep.subr.bf16.mxu0 %v4602_v56  ;;  %v4549_v56 = vld [vmem:[#allocation4 + $0x8] ss:$16 sps:$4 sm:$0xff]  }
 0x11c   :  { %1904 = vmatpush1.bf16.msra.mxu1 %v4477_v54  ;;  %v4543_v54 = vld [vmem:[#allocation2 + $0x7e8] ss:$16 sps:$4 sm:$0xff]  }
 0x11d   :  { %1905 = vmatprep.subr.bf16.mxu1 %v4482_v55  ;;  %v4551_v55 = vld [vmem:[#allocation4 + $0xc] ss:$16 sps:$4 sm:$0xff]  }
 0x11e   :  { %2780 = vmatpush1.bf16.msra.mxu0 %v4600_v57  ;;  %v4557_v57 = vld [vmem:[#allocation4 + $0x2c] ss:$16 sps:$4 sm:$0xff]  }
 0x11f   :  { %2781 = vmatprep.subr.bf16.mxu0 %v4608_v60  ;;  %v4561_v60 = vld [vmem:[#allocation4 + $0x48] ss:$16 sps:$4 sm:$0xff]  }
 0x120   :  { %1906 = vmatpush1.bf16.msra.mxu1 %v4480_v58  ;;  %v4555_v58 = vld [vmem:[#allocation4 + $0x28] ss:$16 sps:$4 sm:$0xff]  }
 0x121   :  { %1907 = vmatprep.subr.bf16.mxu1 %v4485_v59  ;;  %v4563_v59 = vld [vmem:[#allocation4 + $0x4c] ss:$16 sps:$4 sm:$0xff]  }
 0x122   :  { %2782 = vmatpush1.bf16.msra.mxu0 %v4606_v61  ;;  %v4569_v61 = vld [vmem:[#allocation4 + $0x6c] ss:$16 sps:$4 sm:$0xff]  }
 0x123   :  { %2783 = vmatprep.subr.bf16.mxu0 %v4614_v0  ;;  %v4573_v0 = vld [vmem:[#allocation4 + $0x88] ss:$16 sps:$4 sm:$0xff]  }
 0x124   :  { %1908 = vmatpush1.bf16.msra.mxu1 %v4483_v62  ;;  %v4567_v62 = vld [vmem:[#allocation4 + $0x68] ss:$16 sps:$4 sm:$0xff]  }
 0x125   :  { %1909 = vmatprep.subr.bf16.mxu1 %v4488_v63  ;;  %v4575_v63 = vld [vmem:[#allocation4 + $0x8c] ss:$16 sps:$4 sm:$0xff]  }
 0x126   :  { %2784 = vmatpush1.bf16.msra.mxu0 %v4612_v1  ;;  %v4581_v1 = vld [vmem:[#allocation4 + $0xac] ss:$16 sps:$4 sm:$0xff]  }
 0x127   :  { %2785 = vmatprep.subr.bf16.mxu0 %v4620_v4  ;;  %v4593_v4 = vld [vmem:[#allocation4 + $0xec] ss:$16 sps:$4 sm:$0xff]  }
 0x128   :  { %1910 = vmatpush1.bf16.msra.mxu1 %v4486_v2  ;;  %v4579_v2 = vld [vmem:[#allocation4 + $0xa8] ss:$16 sps:$4 sm:$0xff]  }
 0x129   :  { %1911 = vmatprep.subr.bf16.mxu1 %v4491_v3  ;;  %v4585_v3 = vld [vmem:[#allocation4 + $0xc8] ss:$16 sps:$4 sm:$0xff]  }
 0x12a   :  { %2786 = vmatpush1.bf16.msra.mxu0 %v4618_v5  ;;  %v4591_v5 = vld [vmem:[#allocation4 + $0xe8] ss:$16 sps:$4 sm:$0xff]  }
 0x12b   :  { %2787 = vmatprep.subr.bf16.mxu0 %v4626_v10  ;;  %v4605_v10 = vld [vmem:[#allocation4 + $0x12c] ss:$16 sps:$4 sm:$0xff]  }
 0x12c   :  { %1912 = vmatpush1.bf16.msra.mxu1 %v4489_v8  ;;  %v4599_v8 = vld [vmem:[#allocation4 + $0x10c] ss:$16 sps:$4 sm:$0xff]  }
 0x12d   :  { %1913 = vmatprep.subr.bf16.mxu1 %v4494_v9  ;;  %v4597_v9 = vld [vmem:[#allocation4 + $0x108] ss:$16 sps:$4 sm:$0xff]  }
 0x12e   :  { %2788 = vmatpush1.bf16.msra.mxu0 %v4624_v11  ;;  %v4603_v11 = vld [vmem:[#allocation4 + $0x128] ss:$16 sps:$4 sm:$0xff]  }
 0x12f   :  { %2789 = vmatprep.subr.bf16.mxu0 %v4632_v15  ;;  %v4617_v15 = vld [vmem:[#allocation4 + $0x16c] ss:$16 sps:$4 sm:$0xff]  }
 0x130   :  { %1914 = vmatpush1.bf16.msra.mxu1 %v4492_v12  ;;  %v4611_v12 = vld [vmem:[#allocation4 + $0x14c] ss:$16 sps:$4 sm:$0xff]  }
 0x131   :  { %1915 = vmatprep.subr.bf16.mxu1 %v4497_v14  ;;  %v4609_v14 = vld [vmem:[#allocation4 + $0x148] ss:$16 sps:$4 sm:$0xff]  }
 0x132   :  { %2790 = vmatpush1.bf16.msra.mxu0 %v4630_v16  ;;  %v4615_v16 = vld [vmem:[#allocation4 + $0x168] ss:$16 sps:$4 sm:$0xff]  }
 0x133   :  { %2791 = vmatprep.subr.bf16.mxu0 %v4638_v31 }
 0x134   :  { %1916 = vmatpush1.bf16.msra.mxu1 %v4495_v17  ;;  %v4623_v17 = vld [vmem:[#allocation4 + $0x18c] ss:$16 sps:$4 sm:$0xff]  }
 0x135   :  { %1926 = vmatprep.subr.bf16.mxu1 %v4500_v20  ;;  %v4621_v20 = vld [vmem:[#allocation4 + $0x188] ss:$16 sps:$4 sm:$0xff]  }
 0x136   :  { %2792 = vmatpush1.bf16.msra.mxu0 %v4636_v51  ;;  %v4645_v51 = vld [vmem:[#allocation4 + $0x208] ss:$16 sps:$4 sm:$0xff]  }
 0x137   :  { %1918 = vmatmul.mubr.bf16.vlgmr.msra.gmra.mrb[4].mxu1 %v5050_v13  ;;  %v4518_v13 = vld [vmem:[#allocation2 + $0x6cc] ss:$16 sps:$4 sm:$0xff]   ;;  %2802 = vmatprep.subr.bf16.mxu0 %v4644_v38  ;;  %v4651_v38 = vld [vmem:[#allocation4 + $0x228] ss:$16 sps:$4 sm:$0xff]  }
 0x138   :  { %1927 = vmatpush1.bf16.msra.mxu1 %v4498_v22  ;;  %1958 = vmatprep.mubr.bf16.mxu1 %v5059_v19  ;;  %v4629_v22 = vld [vmem:[#allocation4 + $0x1ac] ss:$16 sps:$4 sm:$0xff]  }
 0x139   :  { %1928 = vmatprep.subr.bf16.mxu1 %v4503_v23  ;;  %v4627_v23 = vld [vmem:[#allocation4 + $0x1a8] ss:$16 sps:$4 sm:$0xff]  }
 0x13c   :  { %1929 = vmatpush1.bf16.msra.mxu1 %v4501_v24  ;;  %v4635_v24 = vld [vmem:[#allocation4 + $0x1cc] ss:$16 sps:$4 sm:$0xff]  }
 0x13d   :  { %1930 = vmatprep.subr.bf16.mxu1 %v4506_v25  ;;  %v4633_v25 = vld [vmem:[#allocation4 + $0x1c8] ss:$16 sps:$4 sm:$0xff]  }
 0x140   :  { %1931 = vmatpush1.bf16.msra.mxu1 %v4504_v26  ;;  %v4641_v26 = vld [vmem:[#allocation4 + $0x1ec] ss:$16 sps:$4 sm:$0xff]  }
 0x141   :  { %1932 = vmatprep.subr.bf16.mxu1 %v4509_v6  ;;  %v4639_v6 = vld [vmem:[#allocation4 + $0x1e8] ss:$16 sps:$4 sm:$0xff]  }
 0x144   :  { %1933 = vmatpush1.bf16.msra.mxu1 %v4507_v18  ;;  %v4647_v18 = vld [vmem:[#allocation4 + $0x20c] ss:$16 sps:$4 sm:$0xff]  }
 0x145   :  { %1934 = vmatprep.subr.bf16.mxu1 %v4512_v27 }
 0x148   :  { %1935 = vmatpush1.bf16.msra.mxu1 %v4510_v28 }
 0x149   :  { %1936 = vmatprep.subr.bf16.mxu1 %v4515_v29 }
 0x14a   :  { %v5074_v7 = vpop.f32.mrb[0].mxu1 }
 0x14b   :  { %v5076_v19 = vpop.f32.mrb[1].mxu1 }
 0x14c   :  { %v1677_v32 = vpop.f32.mrb[2].mxu1  ;;  %1937 = vmatpush1.bf16.msra.mxu1 %v4513_v30 }
 0x14d   :  { %v1678_v33 = vpop.f32.mrb[3].mxu1  ;;  %1938 = vmatprep.subr.bf16.mxu1 %v4518_v13 }
 0x150   :  { %1939 = vmatpush1.bf16.msra.mxu1 %v4516_v34  ;;  %v4642_v34 = vld [vmem:[#allocation4 + $0x200] ss:$16 sps:$4 sm:$0xff]  }
 0x151   :  { %1940 = vmatprep.subr.bf16.mxu1 %v4521_v35  ;;  %v4650_v35 = vld [vmem:[#allocation4 + $0x224] ss:$16 sps:$4 sm:$0xff]  }
 0x154   :  { %1941 = vmatpush1.bf16.msra.mxu1 %v4519_v36  ;;  %v4653_v36 = vld [vmem:[#allocation4 + $0x22c] ss:$16 sps:$4 sm:$0xff]  }
 0x155   :  { %1942 = vmatprep.subr.bf16.mxu1 %v4524_v37  ;;  %v4648_v37 = vld [vmem:[#allocation4 + $0x220] ss:$16 sps:$4 sm:$0xff]  }
 0x158   :  { %1943 = vmatpush1.bf16.msra.mxu1 %v4522_v39  ;;  %v4654_v39 = vld [vmem:[#allocation4 + $0x240] ss:$16 sps:$4 sm:$0xff]  }
 0x159   :  { %1944 = vmatprep.subr.bf16.mxu1 %v4527_v40  ;;  %v4657_v40 = vld [vmem:[#allocation4 + $0x248] ss:$16 sps:$4 sm:$0xff]  }
 0x15c   :  { %1945 = vmatpush1.bf16.msra.mxu1 %v4525_v41  ;;  %v4662_v41 = vld [vmem:[#allocation4 + $0x264] ss:$16 sps:$4 sm:$0xff]  }
 0x15d   :  { %1946 = vmatprep.subr.bf16.mxu1 %v4530_v42  ;;  %v4665_v42 = vld [vmem:[#allocation4 + $0x26c] ss:$16 sps:$4 sm:$0xff]  }
 0x160   :  { %1947 = vmatpush1.bf16.msra.mxu1 %v4528_v43  ;;  %v4660_v43 = vld [vmem:[#allocation4 + $0x260] ss:$16 sps:$4 sm:$0xff]  }
 0x161   :  { %1948 = vmatprep.subr.bf16.mxu1 %v4533_v44  ;;  %v4663_v44 = vld [vmem:[#allocation4 + $0x268] ss:$16 sps:$4 sm:$0xff]  }
 0x164   :  { %1949 = vmatpush1.bf16.msra.mxu1 %v4531_v45  ;;  %v4668_v45 = vld [vmem:[#allocation4 + $0x284] ss:$16 sps:$4 sm:$0xff]  }
 0x165   :  { %1950 = vmatprep.subr.bf16.mxu1 %v4536_v46  ;;  %v4671_v46 = vld [vmem:[#allocation4 + $0x28c] ss:$16 sps:$4 sm:$0xff]  }
 0x168   :  { %1951 = vmatpush1.bf16.msra.mxu1 %v4534_v47  ;;  %v4666_v47 = vld [vmem:[#allocation4 + $0x280] ss:$16 sps:$4 sm:$0xff]  }
 0x169   :  { %1952 = vmatprep.subr.bf16.mxu1 %v4539_v48  ;;  %v4669_v48 = vld [vmem:[#allocation4 + $0x288] ss:$16 sps:$4 sm:$0xff]  }
 0x16c   :  { %1953 = vmatpush1.bf16.msra.mxu1 %v4537_v49  ;;  %v4674_v49 = vld [vmem:[#allocation4 + $0x2a4] ss:$16 sps:$4 sm:$0xff]  }
 0x16d   :  { %1954 = vmatprep.subr.bf16.mxu1 %v4542_v50  ;;  %v4677_v50 = vld [vmem:[#allocation4 + $0x2ac] ss:$16 sps:$4 sm:$0xff]  }
 0x170   :  { %1955 = vmatpush1.bf16.msra.mxu1 %v4540_v52  ;;  %v4672_v52 = vld [vmem:[#allocation4 + $0x2a0] ss:$16 sps:$4 sm:$0xff]  }
 0x171   :  { %1956 = vmatprep.subr.bf16.mxu1 %v4545_v53  ;;  %v4675_v53 = vld [vmem:[#allocation4 + $0x2a8] ss:$16 sps:$4 sm:$0xff]  }
 0x174   :  { %1957 = vmatpush1.bf16.msra.mxu1 %v4543_v54  ;;  %v4680_v54 = vld [vmem:[#allocation4 + $0x2c4] ss:$16 sps:$4 sm:$0xff]  }
 0x175   :  { %2843 = vmatprep.subr.bf16.mxu1 %v4551_v55  ;;  %v4683_v55 = vld [vmem:[#allocation4 + $0x2cc] ss:$16 sps:$4 sm:$0xff]  }
 0x177   :  { %1959 = vmatmul.mubr.bf16.vlgmr.msra.gmra.mrb[4].mxu1 %v5067_v21  ;;  %v4587_v21 = vld [vmem:[#allocation4 + $0xcc] ss:$16 sps:$4 sm:$0xff]  }
 0x178   :  { %2844 = vmatpush1.bf16.msra.mxu1 %v4549_v56  ;;  %v4678_v56 = vld [vmem:[#allocation4 + $0x2c0] ss:$16 sps:$4 sm:$0xff]  }
 0x179   :  { %2845 = vmatprep.subr.bf16.mxu1 %v4557_v57  ;;  %v4681_v57 = vld [vmem:[#allocation4 + $0x2c8] ss:$16 sps:$4 sm:$0xff]  }
 0x17c   :  { %2846 = vmatpush1.bf16.msra.mxu1 %v4555_v58  ;;  %v4686_v58 = vld [vmem:[#allocation4 + $0x2e4] ss:$16 sps:$4 sm:$0xff]  }
 0x17d   :  { %2847 = vmatprep.subr.bf16.mxu1 %v4563_v59  ;;  %v4689_v59 = vld [vmem:[#allocation4 + $0x2ec] ss:$16 sps:$4 sm:$0xff]  }
 0x180   :  { %2848 = vmatpush1.bf16.msra.mxu1 %v4561_v60  ;;  %v4684_v60 = vld [vmem:[#allocation4 + $0x2e0] ss:$16 sps:$4 sm:$0xff]  }
 0x181   :  { %2849 = vmatprep.subr.bf16.mxu1 %v4569_v61  ;;  %v4687_v61 = vld [vmem:[#allocation4 + $0x2e8] ss:$16 sps:$4 sm:$0xff]  }
 0x184   :  { %2850 = vmatpush1.bf16.msra.mxu1 %v4567_v62  ;;  %v4692_v62 = vld [vmem:[#allocation4 + $0x304] ss:$16 sps:$4 sm:$0xff]  }
 0x185   :  { %2851 = vmatprep.subr.bf16.mxu1 %v4575_v63  ;;  %v4695_v63 = vld [vmem:[#allocation4 + $0x30c] ss:$16 sps:$4 sm:$0xff]  }
 0x188   :  { %2852 = vmatpush1.bf16.msra.mxu1 %v4573_v0  ;;  %v4690_v0 = vld [vmem:[#allocation4 + $0x300] ss:$16 sps:$4 sm:$0xff]  }
 0x189   :  { %2853 = vmatprep.subr.bf16.mxu1 %v4581_v1  ;;  %v4693_v1 = vld [vmem:[#allocation4 + $0x308] ss:$16 sps:$4 sm:$0xff]  }
 0x18c   :  { %2854 = vmatpush1.bf16.msra.mxu1 %v4579_v2  ;;  %v4698_v2 = vld [vmem:[#allocation4 + $0x324] ss:$16 sps:$4 sm:$0xff]  }
 0x18d   :  { %2855 = vmatprep.subr.bf16.mxu1 %v4587_v21  ;;  %v4701_v21 = vld [vmem:[#allocation4 + $0x32c] ss:$16 sps:$4 sm:$0xff]  }
 0x190   :  { %2856 = vmatpush1.bf16.msra.mxu1 %v4585_v3  ;;  %v4696_v3 = vld [vmem:[#allocation4 + $0x320] ss:$16 sps:$4 sm:$0xff]  }
 0x191   :  { %2857 = vmatprep.subr.bf16.mxu1 %v4593_v4  ;;  %v4699_v4 = vld [vmem:[#allocation4 + $0x328] ss:$16 sps:$4 sm:$0xff]  }
 0x194   :  { %2858 = vmatpush1.bf16.msra.mxu1 %v4591_v5  ;;  %v4704_v5 = vld [vmem:[#allocation4 + $0x344] ss:$16 sps:$4 sm:$0xff]  }
 0x195   :  { %2859 = vmatprep.subr.bf16.mxu1 %v4599_v8  ;;  %v4707_v8 = vld [vmem:[#allocation4 + $0x34c] ss:$16 sps:$4 sm:$0xff]  }
 0x198   :  { %2860 = vmatpush1.bf16.msra.mxu1 %v4597_v9  ;;  %v4702_v9 = vld [vmem:[#allocation4 + $0x340] ss:$16 sps:$4 sm:$0xff]  }
 0x199   :  { %2861 = vmatprep.subr.bf16.mxu1 %v4605_v10  ;;  %v4705_v10 = vld [vmem:[#allocation4 + $0x348] ss:$16 sps:$4 sm:$0xff]  }
 0x19c   :  { %2862 = vmatpush1.bf16.msra.mxu1 %v4603_v11  ;;  %v4710_v11 = vld [vmem:[#allocation4 + $0x364] ss:$16 sps:$4 sm:$0xff]  }
 0x19d   :  { %2863 = vmatprep.subr.bf16.mxu1 %v4611_v12  ;;  %v4713_v12 = vld [vmem:[#allocation4 + $0x36c] ss:$16 sps:$4 sm:$0xff]  }
 0x1a0   :  { %2864 = vmatpush1.bf16.msra.mxu1 %v4609_v14  ;;  %v4708_v14 = vld [vmem:[#allocation4 + $0x360] ss:$16 sps:$4 sm:$0xff]  }
 0x1a1   :  { %2865 = vmatprep.subr.bf16.mxu1 %v4617_v15  ;;  %v4711_v15 = vld [vmem:[#allocation4 + $0x368] ss:$16 sps:$4 sm:$0xff]  }
 0x1a4   :  { %2866 = vmatpush1.bf16.msra.mxu1 %v4615_v16  ;;  %v4716_v16 = vld [vmem:[#allocation4 + $0x384] ss:$16 sps:$4 sm:$0xff]  }
 0x1a5   :  { %2867 = vmatprep.subr.bf16.mxu1 %v4623_v17  ;;  %v4719_v17 = vld [vmem:[#allocation4 + $0x38c] ss:$16 sps:$4 sm:$0xff]  }
 0x1a8   :  { %2868 = vmatpush1.bf16.msra.mxu1 %v4621_v20  ;;  %v4714_v20 = vld [vmem:[#allocation4 + $0x380] ss:$16 sps:$4 sm:$0xff]  }
 0x1a9   :  { %2869 = vmatprep.subr.bf16.mxu1 %v4629_v22  ;;  %v4717_v22 = vld [vmem:[#allocation4 + $0x388] ss:$16 sps:$4 sm:$0xff]  }
 0x1ac   :  { %2870 = vmatpush1.bf16.msra.mxu1 %v4627_v23  ;;  %v4722_v23 = vld [vmem:[#allocation4 + $0x3a4] ss:$16 sps:$4 sm:$0xff]  }
 0x1ad   :  { %2871 = vmatprep.subr.bf16.mxu1 %v4635_v24  ;;  %v4725_v24 = vld [vmem:[#allocation4 + $0x3ac] ss:$16 sps:$4 sm:$0xff]  }
 0x1b0   :  { %2872 = vmatpush1.bf16.msra.mxu1 %v4633_v25  ;;  %v4720_v25 = vld [vmem:[#allocation4 + $0x3a0] ss:$16 sps:$4 sm:$0xff]  }
 0x1b1   :  { %2873 = vmatprep.subr.bf16.mxu1 %v4641_v26  ;;  %v4723_v26 = vld [vmem:[#allocation4 + $0x3a8] ss:$16 sps:$4 sm:$0xff]  }
 0x1b4   :  { %2874 = vmatpush1.bf16.msra.mxu1 %v4639_v6  ;;  %v4728_v6 = vld [vmem:[#allocation4 + $0x3c4] ss:$16 sps:$4 sm:$0xff]  }
 0x1b5   :  { %2884 = vmatprep.subr.bf16.mxu1 %v4647_v18  ;;  %v4731_v18 = vld [vmem:[#allocation4 + $0x3cc] ss:$16 sps:$4 sm:$0xff]  }
 0x1cb   :  { %v1796_v27 = vpop.f32.mrb[0].mxu0 }
 0x1cc   :  { %v4107_v28 = vadd.f32 %v1796_v27, %v5074_v7  ;;  %v1798_v29 = vpop.f32.mrb[1].mxu0  ;;  %v4656_v7 = vld [vmem:[#allocation4 + $0x244] ss:$16 sps:$4 sm:$0xff]   ;;  %v4726_v27 = vld [vmem:[#allocation4 + $0x3c0] ss:$16 sps:$4 sm:$0xff]  }
 0x1cd   :  { %v4108_v30 = vadd.f32 %v1798_v29, %v5076_v19  ;;  %v1800_v13 = vpop.f32.mrb[2].mxu0  ;;  %v4659_v19 = vld [vmem:[#allocation4 + $0x24c] ss:$16 sps:$4 sm:$0xff]   ;;  %v4734_v29 = vld [vmem:[#allocation4 + $0x3e4] ss:$16 sps:$4 sm:$0xff]  }
 0x1ce   :  { %v1801_v31 = vpop.f32.mrb[3].mxu0  ;;  %v1967_v33 = vpack.c.bf16 %v4107_v28, %v4107_v28  ;;  %v4729_v28 = vld [vmem:[#allocation4 + $0x3c8] ss:$16 sps:$4 sm:$0xff]   ;;  %v4732_v13 = vld [vmem:[#allocation4 + $0x3e0] ss:$16 sps:$4 sm:$0xff]  }
 0x1cf   :  { %v1968_v32 = vpack.c.bf16 %v4108_v30, %v4108_v30  ;;  %v4737_v30 = vld [vmem:[#allocation4 + $0x3ec] ss:$16 sps:$4 sm:$0xff]   ;;  %v4735_v31 = vld [vmem:[#allocation4 + $0x3e8] ss:$16 sps:$4 sm:$0xff]  }
 0x1d1   :  { %2793 = vmatprep.mubr.bf16.mxu0 %v1968_v32  ;;  %2875 = vmatprep.mubr.bf16.mxu1 %v1968_v32  ;;  %v4740_v32 = vld [vmem:[#allocation6 + $0x4] ss:$8 sps:$4 sm:$0xff]  }
 0x1d2   :  { %2794 = vmatmul.mubr.bf16.vlgmr.msra.gmra.mrb[4].mxu0 %v1967_v33  ;;  %2876 = vmatmul.mubr.bf16.vlgmr.msra.gmra.mrb[8].mxu1 %v1967_v33 }
 0x1d3   :  { %2803 = vmatpush1.bf16.msra.mxu0 %v4642_v34  ;;  %2885 = vmatpush1.bf16.msra.mxu1 %v4645_v51 }
 0x1d4   :  { %2804 = vmatprep.subr.bf16.mxu0 %v4650_v35  ;;  %2886 = vmatprep.subr.bf16.mxu1 %v4653_v36  ;;  %v4738_v36 = vld [vmem:[#allocation6] ss:$8 sps:$4 sm:$0xff]  }
 0x1d7   :  { %2805 = vmatpush1.bf16.msra.mxu0 %v4648_v37  ;;  %2887 = vmatpush1.bf16.msra.mxu1 %v4651_v38 }
 0x1d8   :  { %2806 = vmatprep.subr.bf16.mxu0 %v4656_v7  ;;  %2888 = vmatprep.subr.bf16.mxu1 %v4659_v19  ;;  %v4743_v7 = vld [vmem:[#allocation6 + $0x14] ss:$8 sps:$4 sm:$0xff]   ;;  %v4741_v19 = vld [vmem:[#allocation6 + $0x10] ss:$8 sps:$4 sm:$0xff]  }
 0x1db   :  { %2807 = vmatpush1.bf16.msra.mxu0 %v4654_v39  ;;  %2889 = vmatpush1.bf16.msra.mxu1 %v4657_v40  ;;  %v4746_v39 = vld [vmem:[#allocation6 + $0x24] ss:$8 sps:$4 sm:$0xff]   ;;  %v4744_v40 = vld [vmem:[#allocation6 + $0x20] ss:$8 sps:$4 sm:$0xff]  }
 0x1dc   :  { %2808 = vmatprep.subr.bf16.mxu0 %v4662_v41  ;;  %2890 = vmatprep.subr.bf16.mxu1 %v4665_v42  ;;  %v4749_v41 = vld [vmem:[#allocation6 + $0x34] ss:$8 sps:$4 sm:$0xff]   ;;  %v4747_v42 = vld [vmem:[#allocation6 + $0x30] ss:$8 sps:$4 sm:$0xff]  }
 0x1df   :  { %2809 = vmatpush1.bf16.msra.mxu0 %v4660_v43  ;;  %2891 = vmatpush1.bf16.msra.mxu1 %v4663_v44  ;;  %v4752_v43 = vld [vmem:[#allocation6 + $0x44] ss:$8 sps:$4 sm:$0xff]   ;;  %v4750_v44 = vld [vmem:[#allocation6 + $0x40] ss:$8 sps:$4 sm:$0xff]  }
 0x1e0   :  { %2810 = vmatprep.subr.bf16.mxu0 %v4668_v45  ;;  %2892 = vmatprep.subr.bf16.mxu1 %v4671_v46  ;;  %v4755_v45 = vld [vmem:[#allocation6 + $0x54] ss:$8 sps:$4 sm:$0xff]   ;;  %v4753_v46 = vld [vmem:[#allocation6 + $0x50] ss:$8 sps:$4 sm:$0xff]  }
 0x1e3   :  { %2811 = vmatpush1.bf16.msra.mxu0 %v4666_v47  ;;  %2893 = vmatpush1.bf16.msra.mxu1 %v4669_v48  ;;  %v4758_v47 = vld [vmem:[#allocation6 + $0x64] ss:$8 sps:$4 sm:$0xff]   ;;  %v4756_v48 = vld [vmem:[#allocation6 + $0x60] ss:$8 sps:$4 sm:$0xff]  }
 0x1e4   :  { %2812 = vmatprep.subr.bf16.mxu0 %v4674_v49  ;;  %2894 = vmatprep.subr.bf16.mxu1 %v4677_v50  ;;  %v4761_v49 = vld [vmem:[#allocation6 + $0x74] ss:$8 sps:$4 sm:$0xff]   ;;  %v4759_v50 = vld [vmem:[#allocation6 + $0x70] ss:$8 sps:$4 sm:$0xff]  }
 0x1e7   :  { %2813 = vmatpush1.bf16.msra.mxu0 %v4672_v52  ;;  %2895 = vmatpush1.bf16.msra.mxu1 %v4675_v53  ;;  %v4764_v52 = vld [vmem:[#allocation6 + $0x84] ss:$8 sps:$4 sm:$0xff]   ;;  %v4762_v53 = vld [vmem:[#allocation6 + $0x80] ss:$8 sps:$4 sm:$0xff]  }
 0x1e8   :  { %2814 = vmatprep.subr.bf16.mxu0 %v4680_v54  ;;  %2896 = vmatprep.subr.bf16.mxu1 %v4683_v55  ;;  %v4767_v54 = vld [vmem:[#allocation6 + $0x94] ss:$8 sps:$4 sm:$0xff]   ;;  %v4765_v55 = vld [vmem:[#allocation6 + $0x90] ss:$8 sps:$4 sm:$0xff]  }
 0x1eb   :  { %2815 = vmatpush1.bf16.msra.mxu0 %v4678_v56  ;;  %2897 = vmatpush1.bf16.msra.mxu1 %v4681_v57  ;;  %v4770_v56 = vld [vmem:[#allocation6 + $0xa4] ss:$8 sps:$4 sm:$0xff]   ;;  %v4768_v57 = vld [vmem:[#allocation6 + $0xa0] ss:$8 sps:$4 sm:$0xff]  }
 0x1ec   :  { %2816 = vmatprep.subr.bf16.mxu0 %v4686_v58  ;;  %2898 = vmatprep.subr.bf16.mxu1 %v4689_v59  ;;  %v4773_v58 = vld [vmem:[#allocation6 + $0xb4] ss:$8 sps:$4 sm:$0xff]   ;;  %v4771_v59 = vld [vmem:[#allocation6 + $0xb0] ss:$8 sps:$4 sm:$0xff]  }
 0x1ef   :  { %2817 = vmatpush1.bf16.msra.mxu0 %v4684_v60  ;;  %2899 = vmatpush1.bf16.msra.mxu1 %v4687_v61  ;;  %v4776_v60 = vld [vmem:[#allocation6 + $0xc4] ss:$8 sps:$4 sm:$0xff]   ;;  %v4774_v61 = vld [vmem:[#allocation6 + $0xc0] ss:$8 sps:$4 sm:$0xff]  }
 0x1f0   :  { %2818 = vmatprep.subr.bf16.mxu0 %v4692_v62  ;;  %2900 = vmatprep.subr.bf16.mxu1 %v4695_v63  ;;  %v4779_v62 = vld [vmem:[#allocation6 + $0xd4] ss:$8 sps:$4 sm:$0xff]   ;;  %v4777_v63 = vld [vmem:[#allocation6 + $0xd0] ss:$8 sps:$4 sm:$0xff]  }
 0x1f3   :  { %2819 = vmatpush1.bf16.msra.mxu0 %v4690_v0  ;;  %2901 = vmatpush1.bf16.msra.mxu1 %v4693_v1  ;;  %v4782_v0 = vld [vmem:[#allocation6 + $0xe4] ss:$8 sps:$4 sm:$0xff]   ;;  %v4780_v1 = vld [vmem:[#allocation6 + $0xe0] ss:$8 sps:$4 sm:$0xff]  }
 0x1f4   :  { %2820 = vmatprep.subr.bf16.mxu0 %v4698_v2  ;;  %2902 = vmatprep.subr.bf16.mxu1 %v4701_v21  ;;  %v4785_v2 = vld [vmem:[#allocation6 + $0xf4] ss:$8 sps:$4 sm:$0xff]   ;;  %v4783_v21 = vld [vmem:[#allocation6 + $0xf0] ss:$8 sps:$4 sm:$0xff]  }
 0x1f7   :  { %2821 = vmatpush1.bf16.msra.mxu0 %v4696_v3  ;;  %2903 = vmatpush1.bf16.msra.mxu1 %v4699_v4  ;;  %v4788_v3 = vld [vmem:[#allocation6 + $0x104] ss:$8 sps:$4 sm:$0xff]  }
 0x1f8   :  { %2822 = vmatprep.subr.bf16.mxu0 %v4704_v5  ;;  %2904 = vmatprep.subr.bf16.mxu1 %v4707_v8  ;;  %v4834_v4 = vld [vmem:[%s5172_s6 + $0x40] sm:$0xff]   ;;  %v4836_v8 = vld [vmem:[%s5172_s6 + $0x48] sm:$0xff]  }
 0x1f9   :  { %v4835_v5 = vld [vmem:[%s5172_s6] sm:$0xff]  }
 0x1fb   :  { %2823 = vmatpush1.bf16.msra.mxu0 %v4702_v9  ;;  %2905 = vmatpush1.bf16.msra.mxu1 %v4705_v10  ;;  %v4837_v9 = vld [vmem:[%s5172_s6 + $0x8] sm:$0xff]   ;;  %v4838_v10 = vld [vmem:[%s5172_s6 + $0x50] sm:$0xff]  }
 0x1fc   :  { %2824 = vmatprep.subr.bf16.mxu0 %v4710_v11  ;;  %2906 = vmatprep.subr.bf16.mxu1 %v4713_v12  ;;  %v4839_v11 = vld [vmem:[%s5172_s6 + $0x10] sm:$0xff]   ;;  %v4840_v12 = vld [vmem:[%s5172_s6 + $0x58] sm:$0xff]  }
 0x1ff   :  { %2825 = vmatpush1.bf16.msra.mxu0 %v4708_v14  ;;  %2907 = vmatpush1.bf16.msra.mxu1 %v4711_v15  ;;  %v4841_v14 = vld [vmem:[%s5172_s6 + $0x18] sm:$0xff]   ;;  %v4842_v15 = vld [vmem:[%s5172_s6 + $0x60] sm:$0xff]  }
 0x200   :  { %2826 = vmatprep.subr.bf16.mxu0 %v4716_v16  ;;  %2908 = vmatprep.subr.bf16.mxu1 %v4719_v17  ;;  %v4843_v16 = vld [vmem:[%s5172_s6 + $0x20] sm:$0xff]   ;;  %v4844_v17 = vld [vmem:[%s5172_s6 + $0x68] sm:$0xff]  }
 0x203   :  { %2827 = vmatpush1.bf16.msra.mxu0 %v4714_v20  ;;  %2909 = vmatpush1.bf16.msra.mxu1 %v4717_v22  ;;  %v4845_v20 = vld [vmem:[%s5172_s6 + $0x28] sm:$0xff]   ;;  %v2101_v22 = vlaneseq }
 0x204   :  { %2828 = vmatprep.subr.bf16.mxu0 %v4722_v23  ;;  %2910 = vmatprep.subr.bf16.mxu1 %v4725_v24 }
 0x205   :  { %v5118_v23 = vshrl.u32 %v2101_v22, 7 }
 0x207   :  { %2829 = vmatpush1.bf16.msra.mxu0 %v4720_v25  ;;  %2911 = vmatpush1.bf16.msra.mxu1 %v4723_v26  ;;  %v2103_v24 = vsub.s32 0, %v5118_v23  ;;  %v5124_v25 = vld [vmem:[%s5169_s3] sm:$0xf]  ;;  %v2107_v26 = vsub.s32 1, %v5118_v23 }
 0x208   :  { %2830 = vmatprep.subr.bf16.mxu0 %v4728_v6  ;;  %2912 = vmatprep.subr.bf16.mxu1 %v4731_v18  ;;  %v2115_v6 = vsub.s32 3, %v5118_v23 }
 0x209   :  { %v2104_v18 = vrot.slane %v5124_v25, %v2103_v24 }
 0x20b   :  { %2831 = vmatpush1.bf16.msra.mxu0 %v4726_v27  ;;  %2913 = vmatpush1.bf16.msra.mxu1 %v4729_v28  ;;  %v2108_v27 = vrot.slane %v5124_v25, %v2107_v26  ;;  %v2116_v28 = vrot.slane %v5124_v25, %v2115_v6  ;;  %v4849_v6 = vld [vmem:[%s5172_s6 + $0x38] sm:$0xff]  }
 0x20c   :  { %2832 = vmatprep.subr.bf16.mxu0 %v4734_v29  ;;  %2914 = vmatprep.subr.bf16.mxu1 %v4737_v30 }
 0x20f   :  { %2833 = vmatpush1.bf16.msra.mxu0 %v4732_v13  ;;  %2915 = vmatpush1.bf16.msra.mxu1 %v4735_v31 }
 0x210   :  { %3329 = vmatprep.subr.bf16.mxu0 %v4740_v32  ;;  %4085 = vmatprep.subr.bf16.mxu1 %v4834_v4  ;;  %v4827_v4 = vld [vmem:[#allocation6 + $0x1d4] ss:$8 sps:$4 sm:$0xff]  }
 0x24a   :  { %v1960_v34 = vpop.f32.mrb[4].mxu1 }
 0x24b   :  { %v1962_v51 = vpop.f32.mrb[5].mxu1  ;;  %v1969_v37 = vpack.c.bf16 %v1960_v34, %v1960_v34 }
 0x24c   :  { %v1970_v33 = vpack.c.bf16 %v1962_v51, %v1962_v51  ;;  %v1964_v35 = vpop.f32.mrb[6].mxu1 }
 0x24d   :  { %v1965_v38 = vpop.f32.mrb[7].mxu1 }
 0x24e   :  { %2834 = vmatprep.mubr.bf16.mxu0 %v1970_v33  ;;  %2916 = vmatprep.mubr.bf16.mxu1 %v1970_v33 }
 0x24f   :  { %2835 = vmatmul.mubr.bf16.vlgmr.msra.gmra.mrb[4].mxu0 %v1969_v37  ;;  %2917 = vmatmul.mubr.bf16.vlgmr.msra.gmra.mrb[8].mxu1 %v1969_v37 }
 0x250   :  { %3330 = vmatpush1.bf16.msra.mxu0 %v4738_v36  ;;  %4086 = vmatpush3.bf16.msra.mxu1 %v4835_v5  ;;  %v4825_v5 = vld [vmem:[#allocation6 + $0x1d0] ss:$8 sps:$4 sm:$0xff]  }
 0x251   :  { %3331 = vmatprep.subr.bf16.mxu0 %v4743_v7  ;;  %4087 = vmatprep.subr.bf16.mxu1 %v4836_v8 }
 0x254   :  { %3332 = vmatpush1.bf16.msra.mxu0 %v4741_v19  ;;  %4088 = vmatpush3.bf16.msra.mxu1 %v4837_v9  ;;  %v4830_v9 = vld [vmem:[#allocation6 + $0x1e4] ss:$8 sps:$4 sm:$0xff]  }
 0x255   :  { %3333 = vmatprep.subr.bf16.mxu0 %v4746_v39  ;;  %4089 = vmatprep.subr.bf16.mxu1 %v4838_v10  ;;  %v4828_v10 = vld [vmem:[#allocation6 + $0x1e0] ss:$8 sps:$4 sm:$0xff]  }
 0x258   :  { %3334 = vmatpush1.bf16.msra.mxu0 %v4744_v40  ;;  %4090 = vmatpush3.bf16.msra.mxu1 %v4839_v11  ;;  %v4786_v40 = vld [vmem:[#allocation6 + $0x100] ss:$8 sps:$4 sm:$0xff]  }
 0x259   :  { %3335 = vmatprep.subr.bf16.mxu0 %v4749_v41  ;;  %4091 = vmatprep.subr.bf16.mxu1 %v4840_v12  ;;  %v4833_v12 = vld [vmem:[#allocation6 + $0x1f4] ss:$8 sps:$4 sm:$0xff]  }
 0x25c   :  { %3336 = vmatpush1.bf16.msra.mxu0 %v4747_v42  ;;  %4092 = vmatpush3.bf16.msra.mxu1 %v4841_v14  ;;  %v4791_v42 = vld [vmem:[#allocation6 + $0x114] ss:$8 sps:$4 sm:$0xff]   ;;  %v4831_v14 = vld [vmem:[#allocation6 + $0x1f0] ss:$8 sps:$4 sm:$0xff]  }
 0x25d   :  { %3337 = vmatprep.subr.bf16.mxu0 %v4752_v43  ;;  %4093 = vmatprep.subr.bf16.mxu1 %v4842_v15 }
 0x260   :  { %3338 = vmatpush1.bf16.msra.mxu0 %v4750_v44  ;;  %4094 = vmatpush3.bf16.msra.mxu1 %v4843_v16  ;;  %v4789_v44 = vld [vmem:[#allocation6 + $0x110] ss:$8 sps:$4 sm:$0xff]  }
 0x261   :  { %3339 = vmatprep.subr.bf16.mxu0 %v4755_v45  ;;  %4095 = vmatprep.subr.bf16.mxu1 %v4844_v17  ;;  %v4794_v45 = vld [vmem:[#allocation6 + $0x124] ss:$8 sps:$4 sm:$0xff]   ;;  %v4846_v17 = vld [vmem:[%s5172_s6 + $0x70] sm:$0xff]  }
 0x264   :  { %3340 = vmatpush1.bf16.msra.mxu0 %v4753_v46  ;;  %4096 = vmatpush3.bf16.msra.mxu1 %v4845_v20  ;;  %v4792_v46 = vld [vmem:[#allocation6 + $0x120] ss:$8 sps:$4 sm:$0xff]   ;;  %v4847_v20 = vld [vmem:[%s5172_s6 + $0x30] sm:$0xff]  }
 0x265   :  { %3341 = vmatprep.subr.bf16.mxu0 %v4758_v47  ;;  %v4797_v47 = vld [vmem:[#allocation6 + $0x134] ss:$8 sps:$4 sm:$0xff]   ;;  %4097 = vmatprep.subr.bf16.mxu1 %v4846_v17 }
 0x268   :  { %3342 = vmatpush1.bf16.msra.mxu0 %v4756_v48  ;;  %v4795_v48 = vld [vmem:[#allocation6 + $0x130] ss:$8 sps:$4 sm:$0xff]   ;;  %4098 = vmatpush3.bf16.msra.mxu1 %v4847_v20 }
 0x269   :  { %3343 = vmatprep.subr.bf16.mxu0 %v4761_v49  ;;  %v4800_v49 = vld [vmem:[#allocation6 + $0x144] ss:$8 sps:$4 sm:$0xff]  }
 0x26c   :  { %3344 = vmatpush1.bf16.msra.mxu0 %v4759_v50  ;;  %v4798_v50 = vld [vmem:[#allocation6 + $0x140] ss:$8 sps:$4 sm:$0xff]  }
 0x26d   :  { %3345 = vmatprep.subr.bf16.mxu0 %v4764_v52  ;;  %v4803_v52 = vld [vmem:[#allocation6 + $0x154] ss:$8 sps:$4 sm:$0xff]  }
 0x270   :  { %3346 = vmatpush1.bf16.msra.mxu0 %v4762_v53  ;;  %v4801_v53 = vld [vmem:[#allocation6 + $0x150] ss:$8 sps:$4 sm:$0xff]  }
 0x271   :  { %3347 = vmatprep.subr.bf16.mxu0 %v4767_v54  ;;  %v4806_v54 = vld [vmem:[#allocation6 + $0x164] ss:$8 sps:$4 sm:$0xff]  }
 0x274   :  { %3348 = vmatpush1.bf16.msra.mxu0 %v4765_v55  ;;  %v4804_v55 = vld [vmem:[#allocation6 + $0x160] ss:$8 sps:$4 sm:$0xff]  }
 0x275   :  { %3349 = vmatprep.subr.bf16.mxu0 %v4770_v56  ;;  %v4809_v56 = vld [vmem:[#allocation6 + $0x174] ss:$8 sps:$4 sm:$0xff]  }
 0x278   :  { %3350 = vmatpush1.bf16.msra.mxu0 %v4768_v57  ;;  %v4807_v57 = vld [vmem:[#allocation6 + $0x170] ss:$8 sps:$4 sm:$0xff]  }
 0x279   :  { %3351 = vmatprep.subr.bf16.mxu0 %v4773_v58  ;;  %v4812_v58 = vld [vmem:[#allocation6 + $0x184] ss:$8 sps:$4 sm:$0xff]  }
 0x27c   :  { %3352 = vmatpush1.bf16.msra.mxu0 %v4771_v59  ;;  %v4810_v59 = vld [vmem:[#allocation6 + $0x180] ss:$8 sps:$4 sm:$0xff]  }
 0x27d   :  { %3353 = vmatprep.subr.bf16.mxu0 %v4776_v60  ;;  %v4815_v60 = vld [vmem:[#allocation6 + $0x194] ss:$8 sps:$4 sm:$0xff]  }
 0x280   :  { %3354 = vmatpush1.bf16.msra.mxu0 %v4774_v61  ;;  %v4813_v61 = vld [vmem:[#allocation6 + $0x190] ss:$8 sps:$4 sm:$0xff]  }
 0x281   :  { %3355 = vmatprep.subr.bf16.mxu0 %v4779_v62  ;;  %v4818_v62 = vld [vmem:[#allocation6 + $0x1a4] ss:$8 sps:$4 sm:$0xff]  }
 0x284   :  { %3356 = vmatpush1.bf16.msra.mxu0 %v4777_v63  ;;  %v4816_v63 = vld [vmem:[#allocation6 + $0x1a0] ss:$8 sps:$4 sm:$0xff]  }
 0x285   :  { %3357 = vmatprep.subr.bf16.mxu0 %v4782_v0  ;;  %v4821_v0 = vld [vmem:[#allocation6 + $0x1b4] ss:$8 sps:$4 sm:$0xff]  }
 0x288   :  { %3358 = vmatpush1.bf16.msra.mxu0 %v4780_v1  ;;  %v4819_v1 = vld [vmem:[#allocation6 + $0x1b0] ss:$8 sps:$4 sm:$0xff]  }
 0x289   :  { %3359 = vmatprep.subr.bf16.mxu0 %v4785_v2  ;;  %v4824_v2 = vld [vmem:[#allocation6 + $0x1c4] ss:$8 sps:$4 sm:$0xff]  }
 0x28c   :  { %3360 = vmatpush1.bf16.msra.mxu0 %v4783_v21  ;;  %v4822_v21 = vld [vmem:[#allocation6 + $0x1c0] ss:$8 sps:$4 sm:$0xff]  }
 0x28d   :  { %3370 = vmatprep.subr.bf16.mxu0 %v4788_v3  ;;  %v2111_v3 = vsub.s32 2, %v5118_v23  ;;  %v4068_v23 = vld [vmem:[%s5173_s7] ss:$0 sm:$0xff] }
 0x28f   :  { %v2112_v8 = vrot.slane %v5124_v25, %v2111_v3  ;;  %v4848_v25 = vld [vmem:[%s5172_s6 + $0x78] sm:$0xff]  }
 0x290   :  { %4099 = vmatprep.subr.bf16.mxu1 %v4848_v25 }
 0x291   :  { %4100 = vmatpush3.bf16.msra.mxu1 %v4849_v6 }
 0x322   :  { %v2836_v29 = vpop.f32.mrb[4].mxu0  ;;  %v5135_v30 = vpop.f32.mrb[8].mxu1 }
 0x323   :  { %v4109_v13 = vadd.f32 %v2836_v29, %v2104_v18  ;;  %v2838_v31 = vpop.f32.mrb[5].mxu0  ;;  %v2920_v32 = vpop.f32.mrb[9].mxu1  ;;  %v4111_v11 = vadd.f32 %v5135_v30, %v2112_v8  ;;  %v2997_v18 = vld [vmem:[%s5171_s5] sm:$0x3] }
 0x324   :  { %v4110_v34 = vadd.f32 %v2838_v31, %v2108_v27  ;;  %v4112_v51 = vadd.f32 %v2920_v32, %v2116_v28  ;;  %v2840_v33 = vpop.f32.mrb[6].mxu0  ;;  %v2922_v35 = vpop.f32.mrb[10].mxu1  ;;  %v3002_v27 = vrot.slane %v2997_v18, %v2103_v24  ;;  %v3006_v28 = vrot.slane %v2997_v18, %v2107_v26 }
 0x325   :  { %v2925_v36 = vmax.f32 %v4109_v13, 0.0  ;;  %v2841_v37 = vpop.f32.mrb[7].mxu0  ;;  %v2923_v38 = vpop.f32.mrb[11].mxu1  ;;  %v2927_v15 = vmax.f32 %v4111_v11, 0.0 }
 0x326   :  { %v2926_v7 = vmax.f32 %v4110_v34, 0.0  ;;  %v2928_v19 = vmax.f32 %v4112_v51, 0.0  ;;  %v3591_v37 = vand.u32 127, %v2101_v22 }
 0x327   :  { %v2929_v41 = vpack.c.bf16 %v2925_v36, %v2925_v36  ;;  %v2931_v16 = vpack.c.bf16 %v2927_v15, %v2927_v15 }
 0x328   :  { %v2930_v39 = vpack.c.bf16 %v2926_v7, %v2926_v7  ;;  %v2932_v43 = vpack.c.bf16 %v2928_v19, %v2928_v19  ;;  %vm3592_vm0 = vcmp.lt.s32.totalorder %v3591_v37, 2 }
 0x32a   :  { %3361 = vmatprep.mubr.bf16.mxu0 %v2930_v39 }
 0x32b   :  { %3362 = vmatmul.mubr.bf16.vlgmr.msra.gmra.mrb[8].mxu0 %v2929_v41 }
 0x32c   :  { %3371 = vmatpush1.bf16.msra.mxu0 %v4786_v40  ;;  %3402 = vmatprep.mubr.bf16.mxu0 %v2932_v43 }
 0x32d   :  { %3372 = vmatprep.subr.bf16.mxu0 %v4791_v42 }
 0x330   :  { %3373 = vmatpush1.bf16.msra.mxu0 %v4789_v44 }
 0x331   :  { %3374 = vmatprep.subr.bf16.mxu0 %v4794_v45 }
 0x334   :  { %3375 = vmatpush1.bf16.msra.mxu0 %v4792_v46 }
 0x335   :  { %3376 = vmatprep.subr.bf16.mxu0 %v4797_v47 }
 0x338   :  { %3377 = vmatpush1.bf16.msra.mxu0 %v4795_v48 }
 0x339   :  { %3378 = vmatprep.subr.bf16.mxu0 %v4800_v49 }
 0x33c   :  { %3379 = vmatpush1.bf16.msra.mxu0 %v4798_v50 }
 0x33d   :  { %3380 = vmatprep.subr.bf16.mxu0 %v4803_v52 }
 0x340   :  { %3381 = vmatpush1.bf16.msra.mxu0 %v4801_v53 }
 0x341   :  { %3382 = vmatprep.subr.bf16.mxu0 %v4806_v54 }
 0x344   :  { %3383 = vmatpush1.bf16.msra.mxu0 %v4804_v55 }
 0x345   :  { %3384 = vmatprep.subr.bf16.mxu0 %v4809_v56 }
 0x348   :  { %3385 = vmatpush1.bf16.msra.mxu0 %v4807_v57 }
 0x349   :  { %3386 = vmatprep.subr.bf16.mxu0 %v4812_v58 }
 0x34c   :  { %3387 = vmatpush1.bf16.msra.mxu0 %v4810_v59 }
 0x34d   :  { %3388 = vmatprep.subr.bf16.mxu0 %v4815_v60 }
 0x350   :  { %3389 = vmatpush1.bf16.msra.mxu0 %v4813_v61 }
 0x351   :  { %3390 = vmatprep.subr.bf16.mxu0 %v4818_v62 }
 0x354   :  { %3391 = vmatpush1.bf16.msra.mxu0 %v4816_v63 }
 0x355   :  { %3392 = vmatprep.subr.bf16.mxu0 %v4821_v0 }
 0x358   :  { %3393 = vmatpush1.bf16.msra.mxu0 %v4819_v1 }
 0x359   :  { %3394 = vmatprep.subr.bf16.mxu0 %v4824_v2 }
 0x35c   :  { %3395 = vmatpush1.bf16.msra.mxu0 %v4822_v21 }
 0x35d   :  { %3396 = vmatprep.subr.bf16.mxu0 %v4827_v4 }
 0x360   :  { %3397 = vmatpush1.bf16.msra.mxu0 %v4825_v5 }
 0x361   :  { %3398 = vmatprep.subr.bf16.mxu0 %v4830_v9 }
 0x364   :  { %3399 = vmatpush1.bf16.msra.mxu0 %v4828_v10 }
 0x365   :  { %3400 = vmatprep.subr.bf16.mxu0 %v4833_v12 }
 0x368   :  { %3401 = vmatpush1.bf16.msra.mxu0 %v4831_v14 }
 0x36b   :  { %3403 = vmatmul.mubr.bf16.vlgmr.msra.gmra.mrb[8].mxu0 %v2931_v16 }
 0x43e   :  { %v3404_v29 = vpop.f32.mrb[8].mxu0 }
 0x43f   :  { %v4113_v30 = vadd.f32 %v3404_v29, %v3002_v27  ;;  %v3406_v13 = vpop.f32.mrb[9].mxu0 }
 0x440   :  { %v4114_v31 = vadd.f32 %v3406_v13, %v3006_v28  ;;  %v3408_v32 = vpop.f32.mrb[10].mxu0 }
 0x441   :  { %v3411_v34 = vmax.f32 %v4113_v30, 0.0  ;;  %v3409_v51 = vpop.f32.mrb[11].mxu0 }
 0x442   :  { %v3412_v33 = vmax.f32 %v4114_v31, 0.0 }
 0x443   :  { %v3413_v36 = vpack.c.bf16 %v3411_v34, %v3411_v34 }
 0x444   :  { %v3414_v35 = vpack.c.bf16 %v3412_v33, %v3412_v33 }
 0x446   :  { %3582 = vmatprep.mubr.bf16.mxu1 %v3414_v35 }
 0x447   :  { %3583 = vmatmul.mubr.bf16.vlgmr.msra.gmra.mrb[12].mxu1 %v3413_v36 }
 0x51a   :  { %v4101_v38 = vpop.f32.mrb[12].mxu1 }
 0x51b   :  { %v4102_v24 = vpop.f32.mrb[13].mxu1 }
 0x51c   :  { %v4103_v26 = vadd.f32 %v4102_v24, %v4101_v38  ;;  %v4104_v7 = vpop.f32.mrb[14].mxu1 }
 0x51d   :  { %v4105_v19 = vpop.f32.mrb[15].mxu1 }
 0x51e   :  { %v3585_v39 = vadd.f32 %v4103_v26, %v4068_v23 }
 0x520   :  { %v3593_v40 = vsel %vm3592_vm0, %v3585_v39, -1e+30 }
 0x521   :  { %3594 = vmax.xlane.f32.xlu0 %v3593_v40 }
 0x5ae   :  { %v3595_v41 = vpop.xlane.xlu0 %3594 }
 0x5af   :  { %v3596_v42 = vsub.f32 %v3593_v40, %v3595_v41 }
 0x5b1   :  { %v3597_v43 = vmul.f32 1.442695, %v3596_v42 }
 0x5b3   :  { %4850 = vpow2.f32 %v3597_v43 }
 0x5bd   :  { %v4851_v44 = vpop.eup %4850 }
 0x5be   :  { %3599 = vadd.xlane.f32.xlu0 %v4851_v44 }
 0x64b   :  { %v3600_v22 = vpop.xlane.xlu0 %3599 }
 0x64c   :  { %4852 = vlog2.f32 %v3600_v22 }
 0x656   :  { %v4853_v45 = vpop.eup %4852 }
 0x657   :  { %v3602_v46 = vmul.f32 0.6931472, %v4853_v45 }
 0x659   :  { %v3603_v47 = vadd.f32 %v3602_v46, %v3595_v41 }
 0x65b   :  { %v3604_v48 = vsub.f32 %v3593_v40, %v3603_v47 }
 0x65d   :  { %3605 = vst [vmem:[%s5174_s8] sm:$0xff] %v3604_v48 }
 0x65e   :  { %3610 = vsyncpa [#allocation3], 1 }
 0x65f   :  { %3611 = vsyncpa [#allocation5], 1 }

</bundles_post_ra>
